<compile_context>
chip_gen: v7x
topology: tpu7x:2x2x1
jax: 0.10.0
libtpu: 0.0.40
codegen_flags: <defaults>
</compile_context>

<pallas_src>
import jax
import jax.numpy as jnp
from jax.experimental import pallas as pl
from jax.experimental.pallas import tpu as pltpu


# ---------------------------------------------------------------------------
# Pallas kernel: one (TM, Din) row tile -> (TM, Dout) row tile, weights resident.
# ---------------------------------------------------------------------------
def _mlp_kernel(x_ref, w1t_ref, b1_ref, w2t_ref, b2_ref, o_ref):
    cdt = w1t_ref.dtype                              # MXU operand dtype (bf16)
    x = x_ref[...].astype(cdt)                       # (TM, Din), cast in-VMEM (no extra HBM pass)

    # fc1: bf16 x bf16 -> f32 accumulate on the MXU
    h = jnp.dot(x, w1t_ref[...], preferred_element_type=jnp.float32) + b1_ref[...]
    # exact (erf) GELU in f32 -- matches nn.GELU() default (approximate='none')
    h = 0.5 * h * (1.0 + jax.lax.erf(h * 0.7071067811865476))
    # dropout p=0.0 -> identity
    # fc2
    y = jnp.dot(h.astype(cdt), w2t_ref[...], preferred_element_type=jnp.float32) + b2_ref[...]

    o_ref[...] = y.astype(o_ref.dtype)


# ---------------------------------------------------------------------------
# One-time parameter preparation (transpose + cast, outside the hot path).
# ---------------------------------------------------------------------------
def prepare_mlp_params(w1, b1, w2, b2, compute_dtype=jnp.bfloat16):
    """w1: (Dh, Din), b1: (Dh,), w2: (Dout, Dh), b2: (Dout,)  (PyTorch Linear layout)."""
    w1t = jnp.asarray(w1, dtype=jnp.float32).T.astype(compute_dtype)   # (Din, Dh)  bf16
    w2t = jnp.asarray(w2, dtype=jnp.float32).T.astype(compute_dtype)   # (Dh, Dout) bf16
    b1r = jnp.asarray(b1, dtype=jnp.float32).reshape(1, -1)            # (1, Dh)    f32
    b2r = jnp.asarray(b2, dtype=jnp.float32).reshape(1, -1)            # (1, Dout)  f32
    return w1t, b1r, w2t, b2r


# ---------------------------------------------------------------------------
# Tile-size / budget helpers.
# ---------------------------------------------------------------------------
def _round_up(n, m):
    return ((n + m - 1) // m) * m


def _device_kind():
    try:
        return jax.devices()[0].device_kind.lower()
    except Exception:
        return ""


def _pick_tm(m, kind):
    if "v5" in kind:
        # 128 rows already fill the 4x128x128 MXU; go bigger only to amortize per-step overhead.
        tm = 512 if m >= 4096 else (256 if m >= 1024 else 128)
    elif "v6" in kind:
        # 2x256x256 MXU: 256 rows per pass.
        tm = 512 if m >= 4096 else 256
    elif "v7" in kind:
        # 256-row MXU, but keep >= 2 grid steps so both TensorCores get work.
        tm = 256 if m >= 512 else 128
    else:
        tm = 256 if m >= 512 else 128
    tm = min(tm, _round_up(max(m, 1), 8))   # never exceed (rounded) row count, keep multiple of 8
    return max(tm, 8)


def _vmem_budget_bytes(tm, din, dh, dout, x_bytes, w_bytes, out_bytes, weight_bufs):
    weights = (din * dh + dh * dout) * w_bytes * weight_bufs
    biases = (dh + dout) * 4 * weight_bufs
    acts = 2 * tm * din * x_bytes + 2 * tm * dout * out_bytes   # double-buffered x / out tiles
    inter = tm * dh * (4 + w_bytes)                             # f32 h + bf16 copy for fc2
    return weights + biases + acts + inter


# ---------------------------------------------------------------------------
# Wrapper: flatten leading dims, tile rows, call pallas_call, reshape back.
# ---------------------------------------------------------------------------
def mlp_pallas(x, w1t, b1r, w2t, b2r, *, tm=None):
    """x: (..., Din); prepared params from `prepare_mlp_params`."""
    orig_shape = x.shape
    din = orig_shape[-1]
    dh = w1t.shape[1]
    dout = w2t.shape[1]
    assert w1t.shape == (din, dh) and w2t.shape == (dh, dout)
    assert b1r.shape == (1, dh) and b2r.shape == (1, dout)

    x2 = x.reshape(-1, din)                        # (M, Din)
    m = x2.shape[0]
    if tm is None:
        tm = _pick_tm(m, _device_kind())
    n_tiles = pl.cdiv(m, tm)                       # ragged last block handled by Pallas
    out_dtype = x.dtype

    # VMEM budget (weights single-buffered in the preferred path).
    need = _vmem_budget_bytes(
        tm, din, dh, dout,
        x_bytes=jnp.dtype(x.dtype).itemsize,
        w_bytes=jnp.dtype(w1t.dtype).itemsize,
        out_bytes=jnp.dtype(out_dtype).itemsize,
        weight_bufs=2,
    )
    cp_kwargs = dict(dimension_semantics=("parallel",))   # v7x: both TCs; v5e/v6e: plain loop
    if need > (32 << 20):                                  # exceed default scoped VMEM -> raise limit
        cp_kwargs["vmem_limit_bytes"] = int(min(need * 3 // 2, 128 << 20))
    compiler_params = pltpu.CompilerParams(**cp_kwargs)

    row_spec = pl.BlockSpec((tm, din), lambda i: (i, 0))
    out_spec = pl.BlockSpec((tm, dout), lambda i: (i, 0))

    def build_call(single_buffer_params):
        def const_spec(shape):                      # grid-invariant parameter, fully resident
            idx = lambda i: (0, 0)
            if single_buffer_params:
                # Fetched once (constant index_map) -> a second buffer is never used.
                return pl.BlockSpec(shape, idx, pipeline_mode=pl.Buffered(1))
            return pl.BlockSpec(shape, idx)

        return pl.pallas_call(
            _mlp_kernel,
            out_shape=jax.ShapeDtypeStruct((m, dout), out_dtype),
            grid=(n_tiles,),
            in_specs=[row_spec,
                      const_spec(w1t.shape), const_spec(b1r.shape),
                      const_spec(w2t.shape), const_spec(b2r.shape)],
            out_specs=out_spec,
            compiler_params=compiler_params,
        )

    try:
        out = build_call(True)(x2, w1t, b1r, w2t, b2r)
    except Exception:
        # pipeline_mode=pl.Buffered(1) not supported on this jax/Mosaic build:
        # fall back to default double-buffered parameter specs (correctness identical).
        out = build_call(False)(x2, w1t, b1r, w2t, b2r)

    return out.reshape(orig_shape[:-1] + (dout,))


# ---------------------------------------------------------------------------
# References for validation.
# ---------------------------------------------------------------------------
def mlp_reference_f32(x, w1, b1, w2, b2):
    """Mirrors the PyTorch module in full f32."""
    hp = jax.lax.Precision.HIGHEST
    h = jnp.einsum("...i,hi->...h", x.astype(jnp.float32), w1, precision=hp) + b1
    h = 0.5 * h * (1.0 + jax.lax.erf(h * 0.7071067811865476))     # exact GELU
    return jnp.einsum("...h,oh->...o", h, w2, precision=hp) + b2


def mlp_reference_matched(x, w1, b1, w2, b2, compute_dtype=jnp.bfloat16):
    """Same math with the same bf16 MXU operands / f32 accumulation as the kernel."""
    cdt = compute_dtype
    h = jnp.dot(x.astype(cdt), w1.T.astype(cdt),
                preferred_element_type=jnp.float32) + b1.astype(jnp.float32)
    h = 0.5 * h * (1.0 + jax.lax.erf(h * 0.7071067811865476))
    y = jnp.dot(h.astype(cdt), w2.T.astype(cdt),
                preferred_element_type=jnp.float32) + b2.astype(jnp.float32)
    return y.astype(x.dtype)


# ---------------------------------------------------------------------------
if __name__ == "__main__":
    f32 = jnp.float32
    key = jax.random.PRNGKey(0)
    ks = jax.random.split(key, 6)

    DIN = 128                 # in_features
    DH = 256                  # hidden_features
    DOUT = 128                # out_features (= in_features, module default)

    w1 = 0.1 * jax.random.normal(ks[1], (DH, DIN), dtype=f32)     # PyTorch Linear: (out, in)
    b1 = 0.1 * jax.random.normal(ks[2], (DH,), dtype=f32)
    w2 = 0.1 * jax.random.normal(ks[3], (DOUT, DH), dtype=f32)
    b2 = 0.1 * jax.random.normal(ks[4], (DOUT,), dtype=f32)

    params = prepare_mlp_params(w1, b1, w2, b2)                   # one-time transpose + bf16 cast

    # (2,128): grid divides evenly.  (2,120): exercises the ragged last row block (no pad copy).
    for (B, N) in [(2, 128), (2, 120)]:
        x = jax.random.normal(ks[0], (B, N, DIN), dtype=f32)

        out = jax.block_until_ready(mlp_pallas(x, *params))
        assert out.shape == (B, N, DOUT) and out.dtype == x.dtype

        ref_m = jax.block_until_ready(mlp_reference_matched(x, w1, b1, w2, b2))
        err_m = float(jnp.max(jnp.abs(out - ref_m)))
        assert err_m < 2e-3, f"(B={B},N={N}) matched-precision max abs err too large: {err_m}"

        ref_f = jax.block_until_ready(mlp_reference_f32(x, w1, b1, w2, b2))
        err_f = float(jnp.max(jnp.abs(out - ref_f)))
        assert err_f < 1e-1, f"(B={B},N={N}) f32-reference max abs err too large: {err_f}"

    print("KERNEL_OK")
</pallas_src>

<mosaic_0001>
module attributes {stable_mosaic.version = 11 : i64} {
  func.func @_mlp_kernel(%arg0: i32, %arg1: memref<128x128xf32, #tpu.memory_space<vmem>>, %arg2: memref<128x256xbf16, #tpu.memory_space<vmem>>, %arg3: memref<1x256xf32, #tpu.memory_space<vmem>>, %arg4: memref<256x128xbf16, #tpu.memory_space<vmem>>, %arg5: memref<1x128xf32, #tpu.memory_space<vmem>>, %arg6: memref<128x128xf32, #tpu.memory_space<vmem>>) attributes {dimension_semantics = [#tpu.dimension_semantics<parallel>], iteration_bounds = array<i64: 2>, scalar_prefetch = 0 : i64, scratch_operands = 0 : i64, tpu.core_type = #tpu.core_type<tc>, window_params = [{transform_indices = @transform_0, window_bounds = array<i64: 128, 128>}, {pipeline_mode = #tpu.pipeline_mode<synchronous>, transform_indices = @transform_1, window_bounds = array<i64: 128, 256>}, {pipeline_mode = #tpu.pipeline_mode<synchronous>, transform_indices = @transform_2, window_bounds = array<i64: 1, 256>}, {pipeline_mode = #tpu.pipeline_mode<synchronous>, transform_indices = @transform_3, window_bounds = array<i64: 256, 128>}, {pipeline_mode = #tpu.pipeline_mode<synchronous>, transform_indices = @transform_4, window_bounds = array<i64: 1, 128>}, {transform_indices = @transform_5, window_bounds = array<i64: 128, 128>}]} {
    %c0 = arith.constant 0 : index
    %c0_0 = arith.constant 0 : index
    %0 = vector.load %arg1[%c0, %c0_0] : memref<128x128xf32, #tpu.memory_space<vmem>>, vector<128x128xf32>
    %1 = arith.truncf %0 : vector<128x128xf32> to vector<128x128xbf16>
    %c0_1 = arith.constant 0 : index
    %c0_2 = arith.constant 0 : index
    %2 = vector.load %arg2[%c0_1, %c0_2] : memref<128x256xbf16, #tpu.memory_space<vmem>>, vector<128x256xbf16>
    %cst = arith.constant dense<0.000000e+00> : vector<128x256xf32>
    %3 = tpu.matmul %1, %2, %cst {dimension_numbers = #tpu.dot_dimension_numbers<[1], [0], [0], [1], [0, 0, 1, 1], [], []>} : vector<128x128xbf16>, vector<128x256xbf16>, vector<128x256xf32> -> vector<128x256xf32>
    %c0_3 = arith.constant 0 : index
    %c0_4 = arith.constant 0 : index
    %4 = vector.load %arg3[%c0_3, %c0_4] : memref<1x256xf32, #tpu.memory_space<vmem>>, vector<1x256xf32>
    %5 = vector.broadcast %4 : vector<1x256xf32> to vector<128x256xf32>
    %6 = arith.addf %3, %5 : vector<128x256xf32>
    %cst_5 = arith.constant 5.000000e-01 : f32
    %7 = vector.broadcast %cst_5 : f32 to vector<128x256xf32>
    %8 = arith.mulf %7, %6 : vector<128x256xf32>
    %cst_6 = arith.constant 0.707106769 : f32
    %9 = vector.broadcast %cst_6 : f32 to vector<128x256xf32>
    %10 = arith.mulf %6, %9 : vector<128x256xf32>
    %11 = math.erf %10 : vector<128x256xf32>
    %cst_7 = arith.constant 1.000000e+00 : f32
    %12 = vector.broadcast %cst_7 : f32 to vector<128x256xf32>
    %13 = arith.addf %12, %11 : vector<128x256xf32>
    %14 = arith.mulf %8, %13 : vector<128x256xf32>
    %15 = arith.truncf %14 : vector<128x256xf32> to vector<128x256xbf16>
    %c0_8 = arith.constant 0 : index
    %c0_9 = arith.constant 0 : index
    %16 = vector.load %arg4[%c0_8, %c0_9] : memref<256x128xbf16, #tpu.memory_space<vmem>>, vector<256x128xbf16>
    %cst_10 = arith.constant dense<0.000000e+00> : vector<128x128xf32>
    %17 = tpu.matmul %15, %16, %cst_10 {dimension_numbers = #tpu.dot_dimension_numbers<[1], [0], [0], [1], [0, 0, 1, 1], [], []>} : vector<128x256xbf16>, vector<256x128xbf16>, vector<128x128xf32> -> vector<128x128xf32>
    %c0_11 = arith.constant 0 : index
    %c0_12 = arith.constant 0 : index
    %18 = vector.load %arg5[%c0_11, %c0_12] : memref<1x128xf32, #tpu.memory_space<vmem>>, vector<1x128xf32>
    %19 = vector.broadcast %18 : vector<1x128xf32> to vector<128x128xf32>
    %20 = arith.addf %17, %19 : vector<128x128xf32>
    %c0_13 = arith.constant 0 : index
    %c0_14 = arith.constant 0 : index
    %21 = vector.load %arg6[%c0_13, %c0_14] : memref<128x128xf32, #tpu.memory_space<vmem>>, vector<128x128xf32>
    tpu.vector_store %arg6[%c0_13, %c0_14], %20 {strides = array<i32>} : memref<128x128xf32, #tpu.memory_space<vmem>>, vector<128x128xf32>,
    return
  }
  func.func @transform_0(%arg0: i32) -> (i32, i32) {
    %c0_i32 = arith.constant 0 : i32
    %c0_i32_0 = arith.constant 0 : i32
    return %arg0, %c0_i32 : i32, i32
  }
  func.func @transform_1(%arg0: i32) -> (i32, i32) {
    %c0_i32 = arith.constant 0 : i32
    %c0_i32_0 = arith.constant 0 : i32
    %c0_i32_1 = arith.constant 0 : i32
    return %c0_i32, %c0_i32_0 : i32, i32
  }
  func.func @transform_2(%arg0: i32) -> (i32, i32) {
    %c0_i32 = arith.constant 0 : i32
    %c0_i32_0 = arith.constant 0 : i32
    %c0_i32_1 = arith.constant 0 : i32
    return %c0_i32, %c0_i32_0 : i32, i32
  }
  func.func @transform_3(%arg0: i32) -> (i32, i32) {
    %c0_i32 = arith.constant 0 : i32
    %c0_i32_0 = arith.constant 0 : i32
    %c0_i32_1 = arith.constant 0 : i32
    return %c0_i32, %c0_i32_0 : i32, i32
  }
  func.func @transform_4(%arg0: i32) -> (i32, i32) {
    %c0_i32 = arith.constant 0 : i32
    %c0_i32_0 = arith.constant 0 : i32
    %c0_i32_1 = arith.constant 0 : i32
    return %c0_i32, %c0_i32_0 : i32, i32
  }
  func.func @transform_5(%arg0: i32) -> (i32, i32) {
    %c0_i32 = arith.constant 0 : i32
    %c0_i32_0 = arith.constant 0 : i32
    return %arg0, %c0_i32 : i32, i32
  }
}

module attributes {stable_mosaic.version = 11 : i64} {
  func.func @_mlp_kernel(%arg0: i32, %arg1: memref<128x128xf32, #tpu.memory_space<vmem>>, %arg2: memref<128x256xbf16, #tpu.memory_space<vmem>>, %arg3: memref<1x256xf32, #tpu.memory_space<vmem>>, %arg4: memref<256x128xbf16, #tpu.memory_space<vmem>>, %arg5: memref<1x128xf32, #tpu.memory_space<vmem>>, %arg6: memref<128x128xf32, #tpu.memory_space<vmem>>) attributes {dimension_semantics = [#tpu.dimension_semantics<parallel>], iteration_bounds = array<i64: 2>, scalar_prefetch = 0 : i64, scratch_operands = 0 : i64, tpu.core_type = #tpu.core_type<tc>, window_params = [{transform_indices = @transform_0, window_bounds = array<i64: 128, 128>}, {pipeline_mode = #tpu.pipeline_mode<synchronous>, transform_indices = @transform_1, window_bounds = array<i64: 128, 256>}, {pipeline_mode = #tpu.pipeline_mode<synchronous>, transform_indices = @transform_2, window_bounds = array<i64: 1, 256>}, {pipeline_mode = #tpu.pipeline_mode<synchronous>, transform_indices = @transform_3, window_bounds = array<i64: 256, 128>}, {pipeline_mode = #tpu.pipeline_mode<synchronous>, transform_indices = @transform_4, window_bounds = array<i64: 1, 128>}, {transform_indices = @transform_5, window_bounds = array<i64: 128, 128>}]} {
    %c0 = arith.constant 0 : index
    %c0_0 = arith.constant 0 : index
    %0 = vector.load %arg1[%c0, %c0_0] : memref<128x128xf32, #tpu.memory_space<vmem>>, vector<128x128xf32>
    %1 = arith.truncf %0 : vector<128x128xf32> to vector<128x128xbf16>
    %c0_1 = arith.constant 0 : index
    %c0_2 = arith.constant 0 : index
    %2 = vector.load %arg2[%c0_1, %c0_2] : memref<128x256xbf16, #tpu.memory_space<vmem>>, vector<128x256xbf16>
    %cst = arith.constant dense<0.000000e+00> : vector<128x256xf32>
    %3 = tpu.matmul %1, %2, %cst {dimension_numbers = #tpu.dot_dimension_numbers<[1], [0], [0], [1], [0, 0, 1, 1], [], []>} : vector<128x128xbf16>, vector<128x256xbf16>, vector<128x256xf32> -> vector<128x256xf32>
    %c0_3 = arith.constant 0 : index
    %c0_4 = arith.constant 0 : index
    %4 = vector.load %arg3[%c0_3, %c0_4] : memref<1x256xf32, #tpu.memory_space<vmem>>, vector<1x256xf32>
    %5 = vector.broadcast %4 : vector<1x256xf32> to vector<128x256xf32>
    %6 = arith.addf %3, %5 : vector<128x256xf32>
    %cst_5 = arith.constant 5.000000e-01 : f32
    %7 = vector.broadcast %cst_5 : f32 to vector<128x256xf32>
    %8 = arith.mulf %7, %6 : vector<128x256xf32>
    %cst_6 = arith.constant 0.707106769 : f32
    %9 = vector.broadcast %cst_6 : f32 to vector<128x256xf32>
    %10 = arith.mulf %6, %9 : vector<128x256xf32>
    %11 = math.erf %10 : vector<128x256xf32>
    %cst_7 = arith.constant 1.000000e+00 : f32
    %12 = vector.broadcast %cst_7 : f32 to vector<128x256xf32>
    %13 = arith.addf %12, %11 : vector<128x256xf32>
    %14 = arith.mulf %8, %13 : vector<128x256xf32>
    %15 = arith.truncf %14 : vector<128x256xf32> to vector<128x256xbf16>
    %c0_8 = arith.constant 0 : index
    %c0_9 = arith.constant 0 : index
    %16 = vector.load %arg4[%c0_8, %c0_9] : memref<256x128xbf16, #tpu.memory_space<vmem>>, vector<256x128xbf16>
    %cst_10 = arith.constant dense<0.000000e+00> : vector<128x128xf32>
    %17 = tpu.matmul %15, %16, %cst_10 {dimension_numbers = #tpu.dot_dimension_numbers<[1], [0], [0], [1], [0, 0, 1, 1], [], []>} : vector<128x256xbf16>, vector<256x128xbf16>, vector<128x128xf32> -> vector<128x128xf32>
    %c0_11 = arith.constant 0 : index
    %c0_12 = arith.constant 0 : index
    %18 = vector.load %arg5[%c0_11, %c0_12] : memref<1x128xf32, #tpu.memory_space<vmem>>, vector<1x128xf32>
    %19 = vector.broadcast %18 : vector<1x128xf32> to vector<128x128xf32>
    %20 = arith.addf %17, %19 : vector<128x128xf32>
    %c0_13 = arith.constant 0 : index
    %c0_14 = arith.constant 0 : index
    %21 = vector.load %arg6[%c0_13, %c0_14] : memref<128x128xf32, #tpu.memory_space<vmem>>, vector<128x128xf32>
    tpu.vector_store %arg6[%c0_13, %c0_14], %20 {strides = array<i32>} : memref<128x128xf32, #tpu.memory_space<vmem>>, vector<128x128xf32>,
    return
  }
  func.func @transform_0(%arg0: i32) -> (i32, i32) {
    %c0_i32 = arith.constant 0 : i32
    %c0_i32_0 = arith.constant 0 : i32
    return %arg0, %c0_i32 : i32, i32
  }
  func.func @transform_1(%arg0: i32) -> (i32, i32) {
    %c0_i32 = arith.constant 0 : i32
    %c0_i32_0 = arith.constant 0 : i32
    %c0_i32_1 = arith.constant 0 : i32
    return %c0_i32, %c0_i32_0 : i32, i32
  }
  func.func @transform_2(%arg0: i32) -> (i32, i32) {
    %c0_i32 = arith.constant 0 : i32
    %c0_i32_0 = arith.constant 0 : i32
    %c0_i32_1 = arith.constant 0 : i32
    return %c0_i32, %c0_i32_0 : i32, i32
  }
  func.func @transform_3(%arg0: i32) -> (i32, i32) {
    %c0_i32 = arith.constant 0 : i32
    %c0_i32_0 = arith.constant 0 : i32
    %c0_i32_1 = arith.constant 0 : i32
    return %c0_i32, %c0_i32_0 : i32, i32
  }
  func.func @transform_4(%arg0: i32) -> (i32, i32) {
    %c0_i32 = arith.constant 0 : i32
    %c0_i32_0 = arith.constant 0 : i32
    %c0_i32_1 = arith.constant 0 : i32
    return %c0_i32, %c0_i32_0 : i32, i32
  }
  func.func @transform_5(%arg0: i32) -> (i32, i32) {
    %c0_i32 = arith.constant 0 : i32
    %c0_i32_0 = arith.constant 0 : i32
    return %arg0, %c0_i32 : i32, i32
  }
}

</mosaic_0001>

<bundles_post_ra>
// kernel: tpu_custom_call.1
= control target key start
LH: loop header
LB: loop body
LE: loop exit
PB: predicated region body
PF: predicated region fallthrough
CT: control target
= control target key end

     0   :  { %10 = vsyncpa [#allocation3], 0  ;;  %s1949_s0 = inlined_call_operand.hbm [shape: f32[256,128], index: 0, kind: input, shape index: {}]   ;;  %s1950_s1 = inlined_call_operand.hbm [shape: bf16[128,256], index: 1, kind: input, shape index: {}]   ;;  %s1951_s2 = inlined_call_operand.vmem [shape: f32[1,256], index: 2, kind: input, shape index: {}]   ;;  %s1952_s3 = inlined_call_operand.hbm [shape: bf16[256,128], index: 3, kind: input, shape index: {}]   ;;  %s1953_s4 = inlined_call_operand.vmem [shape: f32[1,128], index: 4, kind: input, shape index: {}]   ;;  %s1954_s5 = inlined_call_operand.hbm [shape: f32[256,128], index: 5, kind: output, shape index: {}]  }
   0x1   :  { %12 = vsyncpa [#allocation3 + $0x1], 0 }
   0x2   :  { %13 = vsyncpa [#allocation6], 0 }
   0x3   :  { %14 = vsyncpa [#allocation4], 0 }
   0x4   :  { %16 = vsyncpa [#allocation4 + $0x1], 0  ;;  %s1544_s18 = smov 0   ;;  %s1546_s19 = smov 0  }
   0x5   :  { %s1548_s20 = smov 0   ;;  %s1550_s21 = smov 0  }
   0x6 LB: > { %s1565_s22 = sadd.s32 4294967295, %s1501_s21   ;;  %s1050_s23 = sadd.s32 4294967294, %s1501_s21   ;;  %s1501_s21 = sphi %s1550_s21, %s1974_s21   ;;  %s1497_s20 = sphi %s1548_s20, %s1973_s20   ;;  %s1493_s19 = sphi %s1546_s19, %s1972_s19   ;;  %s1489_s18 = sphi %s1544_s18, %s1971_s18  }
   0x7   : > { %p42_p0 = scmp.ne.s32.totalorder %s1493_s19, %s1489_s18  ;;  %p1955_p1 = scmp.eq.s32.totalorder %s1565_s22, 0 }
   0x8   : > { %p156_p3 = scmp.eq.s32.totalorder %s1050_s23, 1  ;;  %p1051_p5 = scmp.ge.s32.totalorder %s1501_s21, 1 }
   0x9   : > { %p1574_p4 = por %p1955_p1, %p42_p0  ;;  %p163_p7 = scmp.lt.s32.totalorder %s1501_s21, 3 }
   0xa   : > { %p1579_p6 = por %p156_p3, %p42_p0  ;;  %s1503_s27 = smov [#allocation5]  }
   0xb   : > { %s1958_s24 = scalar_select %p1574_p4, 1, 0 }
   0xc   : > { %s1959_s25 = scalar_select %p1579_p6, 1, 0 }
   0xd   : > { %p1584_p8 = pnand %p1051_p5, %p163_p7  ;;  %s175_s28 = sshll.u32 %s1503_s27, 4  ;;  %s1588_s28 = int_to_ptr.vmem [resolvable:$true] %s175_s28 }
   0xe   : > { %s1504_s30 = smov [#allocation7]   ;;  %s1345_s9 = scalar_lea.hbm %s1950_s1, 2048 }
   0xf   : > { %p1179_p9 = pneg %p1584_p8  ;;  %s191_s6 = sshll.u32 %s1504_s30, 4  ;;  %s1599_s6 = int_to_ptr.vmem [resolvable:$true] %s191_s6 }
  0x10   : > { %p1346_p12 = scmp.ne.s32.totalorder %s1950_s1, %s1345_s9  ;;  %p1352_p5 = scmp.lt.u32.totalorder %s1345_s9, %s1950_s1 }
  0x11   : > { %p1595_p11 = pnand %p1179_p9, %p1955_p1 }
  0x13   : > { %p1347_p13 = pneg %p1595_p11 }
  0x15   : > { %p1348_p0 = pnand %p1347_p13, %p1346_p12 }
  0x17   : > { %p1349_p3 = pneg %p1348_p0 }
  0x19   : > { %p1354_p7 = pnand %p1352_p5, %p1349_p3 }
  0x1b   : > { %1357 = shalt.err (!%p1354_p7)
}
  0x1c   : > { %s1358_s14 = scalar_lea.vmem %s1588_s28, 2048  ;;  %p1366_p2 = scmp.lt.s32.totalorder %s1588_s28, %s1588_s28 }
  0x1d   : > { %p1359_p9 = scmp.ne.s32.totalorder %s1588_s28, %s1358_s14  ;;  %p1367_p12 = scmp.lt.s32.totalorder %s1358_s14, %s1358_s14 }
  0x1f   : > { %p1361_p10 = pnand %p1359_p9, %p1347_p13  ;;  %p1368_p0 = por %p1367_p12, %p1366_p2 }
  0x21   : > { %p1362_p1 = pneg %p1361_p10 }
  0x23   : > { %p1369_p6 = pnand %p1368_p0, %p1362_p1 }
  0x25   : > { %1372 = shalt.err (!%p1369_p6)
}
  0x26   : > { %s1505_s15 = smov 128   ;;  %s1506_s16 = smov 8  }
  0x27   : > { %1182 = dma.hbm_to_vmem [thread:$0]  (!%p1595_p11), %s1950_s1, 2048, %s1588_s28, [#allocation6], %s1505_s15, %s1505_s15, %s1506_s16  }
  0x28   : > { %s1373_s7 = scalar_lea.hbm %s1952_s3, 2048 }
  0x29   : > { %p1374_p1 = scmp.ne.s32.totalorder %s1952_s3, %s1373_s7  ;;  %p1380_p10 = scmp.lt.u32.totalorder %s1373_s7, %s1952_s3 }
  0x2b   : > { %p1376_p2 = pnand %p1374_p1, %p1347_p13 }
  0x2d   : > { %p1377_p6 = pneg %p1376_p2 }
  0x2f   : > { %p1382_p3 = pnand %p1380_p10, %p1377_p6 }
  0x31   : > { %1385 = shalt.err (!%p1382_p3)
}
  0x32   : > { %s1386_s28 = scalar_lea.vmem %s1599_s6, 2048  ;;  %p1394_p12 = scmp.lt.s32.totalorder %s1599_s6, %s1599_s6 }
  0x33   : > { %p1387_p5 = scmp.ne.s32.totalorder %s1599_s6, %s1386_s28  ;;  %p1395_p0 = scmp.lt.s32.totalorder %s1386_s28, %s1386_s28 }
  0x35   : > { %p1389_p7 = pnand %p1387_p5, %p1347_p13  ;;  %p1396_p1 = por %p1395_p0, %p1394_p12 }
  0x37   : > { %p1390_p9 = pneg %p1389_p7 }
  0x39   : > { %p1397_p2 = pnand %p1396_p1, %p1390_p9 }
  0x3b   : > { %1400 = shalt.err (!%p1397_p2)
}
  0x3c   : > { %s1507_s12 = smov 64   ;;  %s1508_s13 = smov 4  }
  0x3d   : > { %1185 = dma.hbm_to_vmem [thread:$0]  (!%p1595_p11), %s1952_s3, 2048, %s1599_s6, [#allocation6], %s1507_s12, %s1507_s12, %s1508_s13  }
  0x3e   : > { %s1657_s23 = sadd.s32 1, %s1501_s21   ;;  %s29_s30 = sadd.s32 1, %s1497_s20 }
  0x3f   : > { %s26_s27 = ssub.s32 %s1501_s21, %s1657_s23  ;;  %p36_p6 = scmp.ne.s32.totalorder %s1497_s20, %s1493_s19 }
  0x40   : > { %p27_p13 = scmp.eq.s32.totalorder %s26_s27, 0  ;;  %p37_p10 = scmp.eq.s32.totalorder %s1501_s21, 0 }
  0x41   : > { %p1962_p5 = scmp.eq.s32.totalorder %s1565_s22, 1  ;;  %p1196_p9 = scmp.lt.s32.totalorder %s1501_s21, 2 }
  0x42   : > { %s1666_s7 = scalar_select %p27_p13, %s1497_s20, %s29_s30  }
  0x43   : > { %p38_p3 = por %p37_p10, %p36_p6  ;;  %p1670_p7 = por %p1962_p5, %p36_p6 }
  0x44   : > { %s208_s29 = sand.u32 1, %s1497_s20   ;;  %s1101_s6 = sshll.u32 %s1501_s21, 11 }
  0x45   : > { %s1963_s8 = scalar_select %p1670_p7, 1, 0 }
  0x46   : > { %s1055_s9 = sshll.u32 %s208_s29, 7  ;;  %s1680_s28 = scalar_lea.hbm %s1949_s0, %s1101_s6 }
  0x47   : > { %s212_s12 = scalar_lea.vmem [#allocation2], %s1055_s9  ;;  %p1684_p11 = pnand %p1196_p9, %p38_p3 }
  0x48   : > { %s219_s13 = sshll.u32 %s212_s12, 4  ;;  %s1688_s17 = scalar_lea.sflag [#allocation3], %s208_s29  ;;  %s1682_s13 = int_to_ptr.vmem [resolvable:$true] %s219_s13 }
  0x49   : > { %s1401_s27 = scalar_lea.hbm %s1680_s28, 2048  ;;  %p1403_p0 = pneg %p1684_p11 }
  0x4a   : > { %p1402_p12 = scmp.ne.s32.totalorder %s1680_s28, %s1401_s27  ;;  %s1406_s6 = scalar_lea.hbm %s1949_s0, 4096 }
  0x4b   : > { %p1407_p13 = scmp.lt.u32.totalorder %s1680_s28, %s1949_s0  ;;  %p1408_p6 = scmp.lt.u32.totalorder %s1406_s6, %s1401_s27 }
  0x4c   : > { %p1404_p1 = pnand %p1403_p0, %p1402_p12  ;;  %p1410_p3 = scmp.lt.u32.totalorder %s1401_s27, %s1680_s28 }
  0x4d   : > { %p1409_p10 = por %p1408_p6, %p1407_p13 }
  0x4e   : > { %p1405_p2 = pneg %p1404_p1 }
  0x4f   : > { %p1411_p5 = por %p1410_p3, %p1409_p10 }
  0x51   : > { %p1412_p9 = pnand %p1411_p5, %p1405_p2 }
  0x53   : > { %1415 = shalt.err (!%p1412_p9)
}
  0x54   : > { %s1416_s29 = scalar_lea.vmem %s1682_s13, 2048  ;;  %s1509_s12 = smov [#allocation2]  }
  0x55   : > { %p1417_p12 = scmp.ne.s32.totalorder %s1682_s13, %s1416_s29  ;;  %s1421_s30 = sshll.u32 %s1509_s12, 4  ;;  %s1422_s30 = int_to_ptr.vmem [resolvable:$false] %s1421_s30 }
  0x56   : > { %s1423_s9 = scalar_lea.vmem %s1422_s30, 4096  ;;  %p1424_p4 = scmp.lt.s32.totalorder %s1682_s13, %s1422_s30 }
  0x57   : > { %p1419_p1 = pnand %p1417_p12, %p1403_p0  ;;  %p1425_p13 = scmp.lt.s32.totalorder %s1423_s9, %s1416_s29 }
  0x59   : > { %p1420_p7 = pneg %p1419_p1  ;;  %p1426_p6 = por %p1425_p13, %p1424_p4 }
  0x5b   : > { %p1427_p10 = pnand %p1426_p6, %p1420_p7 }
  0x5d   : > { %1430 = shalt.err (!%p1427_p10)
}
  0x5e   : > { %1189 = dma.hbm_to_vmem [thread:$0]  (!%p1684_p11), %s1680_s28, 2048, %s1682_s13, %s1688_s17, %s1505_s15, %s1505_s15, %s1506_s16  }
  0x5f   : > { %231 = sbr.rel (%p1584_p8) target bundleno = 666 (0x29a), region = 40  ;;  %s1722_s27 = sand.u32 (!%p1584_p8), 1, %s1493_s19  }
  0x60   : > { %s1059_s6 = sshll.u32 (!%p1584_p8), %s1722_s27, 7  ;;  %s234_s10 = scalar_lea.sflag (!%p1584_p8), [#allocation3], %s1722_s27 }
  0x61   : > { %s1728_s14 = scalar_lea.vmem (!%p1584_p8), [#allocation2], %s1059_s6  ;;  %p1965_p4 = scmp.ne.s32.totalorder (!%p1584_p8), %s1958_s24, 0 }
  0x66   : > { %1476 = dma.done.wait (%p1965_p4), %s234_s10, 2048  }
  0x67   : > { %1478 = vsyncadd (%p1965_p4), %s234_s10, 4294965248  ;;  %p1966_p7 = scmp.eq.s32.totalorder %s1565_s22, 0 }
  0x69   : > { %1480 = dma.done.wait (%p1966_p7), [#allocation6], 4096   ;;  %p1967_p8 = pmov %p1966_p7 }
  0x6a   : > { %v1510_v0 = vmov 0   ;;  %v1241_v1 = vld [vmem:[#allocation5 + $0x4] ss:$8 sps:$4 sm:$0xff]   ;;  %v1243_v2 = vld [vmem:[#allocation5] ss:$8 sps:$4 sm:$0xff]   ;;  %v277_v24 = vld [vmem:[%s1728_s14 + $0x10] sm:$0xff]  ;;  %v317_v57 = vlaneseq }
  0x6b   : > { %1482 = vsyncadd (%p1967_p8), [#allocation6], 4294963200  ;;  %439 = vmatprep.mubr.bf16.mxu0 %v1510_v0  ;;  %407 = vmatprep.subr.bf16.mxu0 %v1241_v1  ;;  %v1244_v3 = vld [vmem:[#allocation5 + $0x14] ss:$8 sps:$4 sm:$0xff]   ;;  %v1246_v4 = vld [vmem:[#allocation5 + $0x10] ss:$8 sps:$4 sm:$0xff]  }
  0x6c   : > { %408 = vmatpush1.bf16.msra.mxu0 %v1243_v2  ;;  %v1247_v5 = vld [vmem:[#allocation5 + $0x24] ss:$8 sps:$4 sm:$0xff]   ;;  %v1249_v6 = vld [vmem:[#allocation5 + $0x20] ss:$8 sps:$4 sm:$0xff]   ;;  %v1250_v7 = vld [vmem:[#allocation5 + $0x34] ss:$8 sps:$4 sm:$0xff]  }
  0x6d   : > { %409 = vmatprep.subr.bf16.mxu0 %v1244_v3  ;;  %v1252_v8 = vld [vmem:[#allocation5 + $0x30] ss:$8 sps:$4 sm:$0xff]   ;;  %v1253_v9 = vld [vmem:[#allocation5 + $0x44] ss:$8 sps:$4 sm:$0xff]   ;;  %v1255_v10 = vld [vmem:[#allocation5 + $0x40] ss:$8 sps:$4 sm:$0xff]  }
  0x6e   : > { %v1256_v11 = vld [vmem:[#allocation5 + $0x54] ss:$8 sps:$4 sm:$0xff]   ;;  %v1265_v12 = vld [vmem:[#allocation7 + $0x40] sm:$0xff]   ;;  %v1258_v13 = vld [vmem:[#allocation5 + $0x50] ss:$8 sps:$4 sm:$0xff]   ;;  %v318_v58 = vshrl.u32 %v317_v57, 7 }
  0x6f   : > { %v1266_v14 = vld [vmem:[#allocation7] sm:$0xff]   ;;  %1103 = vmatprep.subr.bf16.mxu1 %v1265_v12  ;;  %v1267_v15 = vld [vmem:[#allocation7 + $0x48] sm:$0xff]   ;;  %v1262_v19 = vld [vmem:[#allocation5 + $0x74] ss:$8 sps:$4 sm:$0xff]   ;;  %s1865_s28 = scalar_lea.vmem [#allocation8], %s1059_s6  ;;  %s1102_s13 = sshll.u32 %s1565_s22, 11 }
  0x70   : > { %410 = vmatpush1.bf16.msra.mxu0 %v1246_v4  ;;  %1104 = vmatpush3.bf16.msra.mxu1 %v1266_v14  ;;  %v1268_v16 = vld [vmem:[#allocation7 + $0x8] sm:$0xff]   ;;  %v1264_v20 = vld [vmem:[#allocation5 + $0x70] ss:$8 sps:$4 sm:$0xff]   ;;  %v275_v21 = vld [vmem:[%s1728_s14] sm:$0xff]  ;;  %v319_v59 = vsub.s32 0, %v318_v58  ;;  %v323_v61 = vsub.s32 1, %v318_v58  ;;  %s1900_s12 = scalar_lea.hbm %s1954_s5, %s1102_s13 }
  0x71   : > { %411 = vmatprep.subr.bf16.mxu0 %v1247_v5  ;;  %v1259_v17 = vld [vmem:[#allocation5 + $0x64] ss:$8 sps:$4 sm:$0xff]   ;;  %1105 = vmatprep.subr.bf16.mxu1 %v1267_v15  ;;  %v1261_v18 = vld [vmem:[#allocation5 + $0x60] ss:$8 sps:$4 sm:$0xff]   ;;  %v278_v25 = vld [vmem:[%s1728_s14 + $0x18] sm:$0xff]  ;;  %s958_s17 = sshll.u32 %s1865_s28, 4  ;;  %s1902_s17 = int_to_ptr.vmem [resolvable:$true] %s958_s17 }
  0x72   : > { %v276_v22 = vld [vmem:[%s1728_s14 + $0x8] sm:$0xff]  ;;  %v292_v26 = vpack.c.bf16 %v278_v25, %v277_v24  ;;  %v279_v27 = vld [vmem:[%s1728_s14 + $0x20] sm:$0xff]  ;;  %v281_v30 = vld [vmem:[%s1728_s14 + $0x30] sm:$0xff]  ;;  %s945_s22 = scalar_lea.sflag [#allocation4], %s1722_s27  ;;  %s1431_s30 = scalar_lea.vmem %s1902_s17, 2048 }
  0x73   : > { %v291_v23 = vpack.c.bf16 %v276_v22, %v275_v21  ;;  %v280_v28 = vld [vmem:[%s1728_s14 + $0x28] sm:$0xff]  ;;  %v282_v31 = vld [vmem:[%s1728_s14 + $0x38] sm:$0xff]  ;;  %v283_v33 = vld [vmem:[%s1728_s14 + $0x40] sm:$0xff]  ;;  %p1432_p11 = scmp.ne.s32.totalorder %s1902_s17, %s1431_s30  ;;  %p1968_p0 = scmp.ne.s32.totalorder %s1963_s8, 0 }
  0x74   : > { %412 = vmatpush1.bf16.msra.mxu0 %v1249_v6  ;;  %1106 = vmatpush3.bf16.msra.mxu1 %v1268_v16  ;;  %v293_v29 = vpack.c.bf16 %v280_v28, %v279_v27  ;;  %v294_v32 = vpack.c.bf16 %v282_v31, %v281_v30  ;;  %v284_v34 = vld [vmem:[%s1728_s14 + $0x48] sm:$0xff]  ;;  %v285_v36 = vld [vmem:[%s1728_s14 + $0x50] sm:$0xff]  ;;  %v286_v37 = vld [vmem:[%s1728_s14 + $0x58] sm:$0xff]  ;;  %s1511_s9 = smov [#allocation8]  }
  0x75   : > { %413 = vmatprep.subr.bf16.mxu0 %v1250_v7  ;;  %v295_v35 = vpack.c.bf16 %v284_v34, %v283_v33  ;;  %v296_v38 = vpack.c.bf16 %v286_v37, %v285_v36  ;;  %v287_v39 = vld [vmem:[%s1728_s14 + $0x60] sm:$0xff]  ;;  %v288_v40 = vld [vmem:[%s1728_s14 + $0x68] sm:$0xff]  ;;  %v289_v42 = vld [vmem:[%s1728_s14 + $0x70] sm:$0xff]  ;;  %p1433_p2 = pnand %p1432_p11, %p1968_p0  ;;  %s1435_s6 = sshll.u32 %s1511_s9, 4  ;;  %s1436_s6 = int_to_ptr.vmem [resolvable:$false] %s1435_s6 }
  0x76   : > { %v297_v41 = vpack.c.bf16 %v288_v40, %v287_v39  ;;  %v290_v43 = vld [vmem:[%s1728_s14 + $0x78] sm:$0xff]  ;;  %v1269_v45 = vld [vmem:[#allocation7 + $0x50] sm:$0xff]   ;;  %v1273_v49 = vld [vmem:[#allocation7 + $0x60] sm:$0xff]   ;;  %s1437_s10 = scalar_lea.vmem %s1436_s6, 4096  ;;  %p1438_p5 = scmp.lt.s32.totalorder %s1902_s17, %s1436_s6 }
  0x77   : > { %v298_v44 = vpack.c.bf16 %v290_v43, %v289_v42  ;;  %v1270_v46 = vld [vmem:[#allocation7 + $0x10] sm:$0xff]   ;;  %1107 = vmatprep.subr.bf16.mxu1 %v1269_v45  ;;  %v1271_v47 = vld [vmem:[#allocation7 + $0x58] sm:$0xff]   ;;  %v1274_v50 = vld [vmem:[#allocation7 + $0x20] sm:$0xff]   ;;  %p1434_p3 = pneg %p1433_p2  ;;  %p1439_p9 = scmp.lt.s32.totalorder %s1437_s10, %s1431_s30 }
  0x78   : > { %414 = vmatpush1.bf16.msra.mxu0 %v1252_v8  ;;  %1108 = vmatpush3.bf16.msra.mxu1 %v1270_v46  ;;  %v1272_v48 = vld [vmem:[#allocation7 + $0x18] sm:$0xff]   ;;  %v1275_v51 = vld [vmem:[#allocation7 + $0x68] sm:$0xff]   ;;  %v1277_v53 = vld [vmem:[#allocation7 + $0x70] sm:$0xff]  }
  0x79   : > { %415 = vmatprep.subr.bf16.mxu0 %v1253_v9  ;;  %1109 = vmatprep.subr.bf16.mxu1 %v1271_v47  ;;  %v1276_v52 = vld [vmem:[#allocation7 + $0x28] sm:$0xff]   ;;  %v1278_v54 = vld [vmem:[#allocation7 + $0x30] sm:$0xff]   ;;  %v1279_v55 = vld [vmem:[#allocation7 + $0x78] sm:$0xff]   ;;  %p1440_p12 = por %p1439_p9, %p1438_p5 }
  0x7a   : > { %v1280_v56 = vld [vmem:[#allocation7 + $0x38] sm:$0xff]   ;;  %v315_v60 = vld [vmem:[%s1951_s2] sm:$0x3] }
  0x7b   : > { %v1765_v62 = vrot.slane %v315_v60, %v319_v59  ;;  %v1767_v63 = vrot.slane %v315_v60, %v323_v61  ;;  %p1441_p1 = pnand %p1440_p12, %p1434_p3 }
  0x7c   : > { %416 = vmatpush1.bf16.msra.mxu0 %v1255_v10  ;;  %1110 = vmatpush3.bf16.msra.mxu1 %v1272_v48 }
  0x7d   : > { %417 = vmatprep.subr.bf16.mxu0 %v1256_v11  ;;  %1111 = vmatprep.subr.bf16.mxu1 %v1273_v49 }
  0x80   : > { %418 = vmatpush1.bf16.msra.mxu0 %v1258_v13  ;;  %1112 = vmatpush3.bf16.msra.mxu1 %v1274_v50 }
  0x81   : > { %419 = vmatprep.subr.bf16.mxu0 %v1259_v17  ;;  %1113 = vmatprep.subr.bf16.mxu1 %v1275_v51 }
  0x84   : > { %420 = vmatpush1.bf16.msra.mxu0 %v1261_v18  ;;  %1114 = vmatpush3.bf16.msra.mxu1 %v1276_v52 }
  0x85   : > { %421 = vmatprep.subr.bf16.mxu0 %v1262_v19  ;;  %1115 = vmatprep.subr.bf16.mxu1 %v1277_v53 }
  0x88   : > { %422 = vmatpush1.bf16.msra.mxu0 %v1264_v20  ;;  %1116 = vmatpush3.bf16.msra.mxu1 %v1278_v54 }
  0x89   : > { %1117 = vmatprep.subr.bf16.mxu1 %v1279_v55 }
  0x8b   : > { %440 = vmatmul.mubr.bf16.vlgmr.msra.gmra.mrb[0].mxu0 %v291_v23 }
  0x8c   : > { %449 = vmatprep.mubr.bf16.mxu0 %v1510_v0  ;;  %1118 = vmatpush3.bf16.msra.mxu1 %v1280_v56 }
  0x93   : > { %450 = vmatmul.mubr.bf16.gmra.mrb[4].mxu0 %v292_v26 }
  0x94   : > { %459 = vmatprep.mubr.bf16.mxu0 %v1510_v0 }
  0x9b   : > { %460 = vmatmul.mubr.bf16.gmra.mrb[8].mxu0 %v293_v29 }
  0x9c   : > { %469 = vmatprep.mubr.bf16.mxu0 %v1510_v0 }
  0xa3   : > { %470 = vmatmul.mubr.bf16.gmra.mrb[12].mxu0 %v294_v32 }
  0xa4   : > { %479 = vmatprep.mubr.bf16.mxu0 %v1510_v0 }
  0xab   : > { %480 = vmatmul.mubr.bf16.gmra.mrb[16].mxu0 %v295_v35 }
  0xac   : > { %489 = vmatprep.mubr.bf16.mxu0 %v1510_v0 }
  0xb3   : > { %490 = vmatmul.mubr.bf16.gmra.mrb[20].mxu0 %v296_v38 }
  0xb4   : > { %499 = vmatprep.mubr.bf16.mxu0 %v1510_v0 }
  0xbb   : > { %500 = vmatmul.mubr.bf16.gmra.mrb[24].mxu0 %v297_v41 }
  0xbc   : > { %509 = vmatprep.mubr.bf16.mxu0 %v1510_v0 }
  0xc3   : > { %510 = vmatmul.mubr.bf16.gmra.mrb[28].mxu0 %v298_v44 }
 0x15e   : > { %v441_v0 = vpop.f32.mrb[0].mxu0 }
 0x15f   : > { %v442_v1 = vadd.f32 %v441_v0, %v1765_v62  ;;  %v443_v2 = vpop.f32.mrb[1].mxu0 }
 0x160   : > { %v444_v3 = vadd.f32 %v443_v2, %v1767_v63  ;;  %v445_v4 = vpop.f32.mrb[2].mxu0 }
 0x161   : > { %v552_v5 = vmul.f32 0.70710677, %v442_v1  ;;  %v446_v6 = vadd.f32 %v445_v4, %v1765_v62  ;;  %v447_v7 = vpop.f32.mrb[3].mxu0  ;;  %v520_v28 = vmul.f32 0.5, %v442_v1 }
 0x162   : > { %v553_v8 = vmul.f32 0.70710677, %v444_v3  ;;  %v448_v9 = vadd.f32 %v447_v7, %v1767_v63  ;;  %v521_v38 = vmul.f32 0.5, %v444_v3 }
 0x163   : > { %1281 = verf.f32 %v552_v5  ;;  %v554_v10 = vmul.f32 0.70710677, %v446_v6  ;;  %v522_v33 = vmul.f32 0.5, %v446_v6 }
 0x164   : > { %1283 = verf.f32 %v553_v8  ;;  %v555_v11 = vmul.f32 0.70710677, %v448_v9  ;;  %v523_v44 = vmul.f32 0.5, %v448_v9 }
 0x165   : > { %1285 = verf.f32 %v554_v10 }
 0x166   : > { %1287 = verf.f32 %v555_v11  ;;  %v451_v12 = vpop.f32.mrb[4].mxu0 }
 0x167   : > { %v452_v13 = vadd.f32 %v451_v12, %v1765_v62  ;;  %v453_v14 = vpop.f32.mrb[5].mxu0 }
 0x168   : > { %v454_v15 = vadd.f32 %v453_v14, %v1767_v63  ;;  %v455_v16 = vpop.f32.mrb[6].mxu0 }
 0x169   : > { %v556_v17 = vmul.f32 0.70710677, %v452_v13  ;;  %v456_v18 = vadd.f32 %v455_v16, %v1765_v62  ;;  %v457_v19 = vpop.f32.mrb[7].mxu0  ;;  %v524_v1 = vmul.f32 0.5, %v452_v13 }
 0x16a   : > { %v557_v20 = vmul.f32 0.70710677, %v454_v15  ;;  %v458_v21 = vadd.f32 %v457_v19, %v1767_v63  ;;  %v525_v6 = vmul.f32 0.5, %v454_v15 }
 0x16b   : > { %1289 = verf.f32 %v556_v17  ;;  %v558_v22 = vmul.f32 0.70710677, %v456_v18  ;;  %v526_v2 = vmul.f32 0.5, %v456_v18 }
 0x16c   : > { %1291 = verf.f32 %v557_v20  ;;  %v559_v23 = vmul.f32 0.70710677, %v458_v21  ;;  %v527_v7 = vmul.f32 0.5, %v458_v21 }
 0x16d   : > { %v1282_v24 = vpop.eup %1281  ;;  %1293 = verf.f32 %v558_v22 }
 0x16e   : > { %v1284_v25 = vpop.eup %1283  ;;  %1295 = verf.f32 %v559_v23  ;;  %v461_v26 = vpop.f32.mrb[8].mxu0  ;;  %v616_v29 = vadd.f32 1.0, %v1282_v24 }
 0x16f   : > { %v1286_v27 = vpop.eup %1285  ;;  %v1778_v30 = vadd.f32 %v461_v26, %v1765_v62  ;;  %v463_v31 = vpop.f32.mrb[9].mxu0  ;;  %v617_v37 = vadd.f32 1.0, %v1284_v25 }
 0x170   : > { %v1288_v32 = vpop.eup %1287  ;;  %v618_v34 = vadd.f32 1.0, %v1286_v27  ;;  %v1781_v35 = vadd.f32 %v463_v31, %v1767_v63  ;;  %v465_v36 = vpop.f32.mrb[10].mxu0  ;;  %v648_v47 = vmul.f32 %v616_v29, %v520_v28 }
 0x171   : > { %v560_v39 = vmul.f32 0.70710677, %v1778_v30  ;;  %v1785_v40 = vadd.f32 %v465_v36, %v1765_v62  ;;  %v467_v41 = vpop.f32.mrb[11].mxu0  ;;  %v619_v42 = vadd.f32 1.0, %v1288_v32  ;;  %v649_v50 = vmul.f32 %v617_v37, %v521_v38 }
 0x172   : > { %v650_v43 = vmul.f32 %v618_v34, %v522_v33  ;;  %v561_v45 = vmul.f32 0.70710677, %v1781_v35  ;;  %v1789_v46 = vadd.f32 %v467_v41, %v1767_v63  ;;  %v528_v32 = vmul.f32 0.5, %v1778_v30 }
 0x173   : > { %1297 = verf.f32 %v560_v39  ;;  %v562_v48 = vmul.f32 0.70710677, %v1785_v40  ;;  %v651_v51 = vmul.f32 %v619_v42, %v523_v44  ;;  %v530_v33 = vmul.f32 0.5, %v1785_v40 }
 0x174   : > { %1299 = verf.f32 %v561_v45  ;;  %v563_v49 = vmul.f32 0.70710677, %v1789_v46  ;;  %v680_v53 = vpack.c.bf16 %v650_v43, %v648_v47  ;;  %v529_v38 = vmul.f32 0.5, %v1781_v35 }
 0x175   : > { %v1290_v52 = vpop.eup %1289  ;;  %1301 = verf.f32 %v562_v48  ;;  %v681_v57 = vpack.c.bf16 %v651_v51, %v649_v50  ;;  %v531_v39 = vmul.f32 0.5, %v1789_v46 }
 0x176   : > { %v1292_v54 = vpop.eup %1291  ;;  %v620_v55 = vadd.f32 1.0, %v1290_v52  ;;  %1303 = verf.f32 %v563_v49  ;;  %v471_v56 = vpop.f32.mrb[12].mxu0 }
 0x177   : > { %v1294_v58 = vpop.eup %1293  ;;  %v621_v59 = vadd.f32 1.0, %v1292_v54  ;;  %v1794_v60 = vadd.f32 %v471_v56, %v1765_v62  ;;  %v473_v61 = vpop.f32.mrb[13].mxu0  ;;  %863 = vmatprep.mubr.bf16.mxu1 %v681_v57 }
 0x178   : > { %v1296_v0 = vpop.eup %1295  ;;  %v622_v3 = vadd.f32 1.0, %v1294_v58  ;;  %v1797_v4 = vadd.f32 %v473_v61, %v1767_v63  ;;  %v475_v5 = vpop.f32.mrb[14].mxu0  ;;  %864 = vmatmul.mubr.bf16.vlgmr.msra.gmra.mrb[0].mxu1 %v680_v53  ;;  %v652_v11 = vmul.f32 %v620_v55, %v524_v1 }
 0x179   : > { %v623_v8 = vadd.f32 1.0, %v1296_v0  ;;  %v564_v9 = vmul.f32 0.70710677, %v1794_v60  ;;  %v477_v10 = vpop.f32.mrb[15].mxu0  ;;  %v476_v13 = vadd.f32 %v475_v5, %v1765_v62  ;;  %v653_v16 = vmul.f32 %v621_v59, %v525_v6 }
 0x17a   : > { %v654_v12 = vmul.f32 %v622_v3, %v526_v2  ;;  %v565_v14 = vmul.f32 0.70710677, %v1797_v4  ;;  %v478_v18 = vadd.f32 %v477_v10, %v1767_v63  ;;  %v532_v59 = vmul.f32 0.5, %v1794_v60 }
 0x17b   : > { %v655_v17 = vmul.f32 %v623_v8, %v527_v7  ;;  %1305 = verf.f32 %v564_v9  ;;  %v566_v19 = vmul.f32 0.70710677, %v476_v13  ;;  %v533_v3 = vmul.f32 0.5, %v1797_v4 }
 0x17c   : > { %1307 = verf.f32 %v565_v14  ;;  %v682_v15 = vpack.c.bf16 %v654_v12, %v652_v11  ;;  %v567_v21 = vmul.f32 0.70710677, %v478_v18  ;;  %v534_v5 = vmul.f32 0.5, %v476_v13 }
 0x17d   : > { %v1298_v20 = vpop.eup %1297  ;;  %v683_v22 = vpack.c.bf16 %v655_v17, %v653_v16  ;;  %1309 = verf.f32 %v566_v19  ;;  %v535_v9 = vmul.f32 0.5, %v478_v18 }
 0x17e   : > { %v1300_v23 = vpop.eup %1299  ;;  %v624_v24 = vadd.f32 1.0, %v1298_v20  ;;  %v481_v25 = vpop.f32.mrb[16].mxu0  ;;  %1311 = verf.f32 %v567_v21 }
 0x17f   : > { %v1302_v26 = vpop.eup %1301  ;;  %v625_v27 = vadd.f32 1.0, %v1300_v23  ;;  %v1804_v28 = vadd.f32 %v481_v25, %v1765_v62  ;;  %v483_v29 = vpop.f32.mrb[17].mxu0  ;;  %871 = vmatprep.mubr.bf16.mxu1 %v683_v22 }
 0x180   : > { %v1304_v31 = vpop.eup %1303  ;;  %v626_v34 = vadd.f32 1.0, %v1302_v26  ;;  %v1809_v36 = vadd.f32 %v483_v29, %v1767_v63  ;;  %v485_v37 = vpop.f32.mrb[18].mxu0  ;;  %872 = vmatmul.mubr.bf16.gmra.mrb[4].mxu1 %v682_v15  ;;  %v656_v44 = vmul.f32 %v624_v24, %v528_v32 }
 0x181   : > { %v627_v41 = vadd.f32 1.0, %v1304_v31  ;;  %v568_v42 = vmul.f32 0.70710677, %v1804_v28  ;;  %v487_v43 = vpop.f32.mrb[19].mxu0  ;;  %v486_v40 = vadd.f32 %v485_v37, %v1765_v62  ;;  %v657_v47 = vmul.f32 %v625_v27, %v529_v38 }
 0x182   : > { %v658_v45 = vmul.f32 %v626_v34, %v530_v33  ;;  %v569_v30 = vmul.f32 0.70710677, %v1809_v36  ;;  %v488_v49 = vadd.f32 %v487_v43, %v1767_v63  ;;  %v536_v27 = vmul.f32 0.5, %v1804_v28 }
 0x183   : > { %v659_v48 = vmul.f32 %v627_v41, %v531_v39  ;;  %1313 = verf.f32 %v568_v42  ;;  %v570_v35 = vmul.f32 0.70710677, %v486_v40  ;;  %v537_v34 = vmul.f32 0.5, %v1809_v36 }
 0x184   : > { %1315 = verf.f32 %v569_v30  ;;  %v684_v50 = vpack.c.bf16 %v658_v45, %v656_v44  ;;  %v571_v51 = vmul.f32 0.70710677, %v488_v49  ;;  %v538_v37 = vmul.f32 0.5, %v486_v40 }
 0x185   : > { %v1306_v46 = vpop.eup %1305  ;;  %v685_v52 = vpack.c.bf16 %v659_v48, %v657_v47  ;;  %1317 = verf.f32 %v570_v35  ;;  %v539_v42 = vmul.f32 0.5, %v488_v49 }
 0x186   : > { %v1308_v53 = vpop.eup %1307  ;;  %v491_v54 = vpop.f32.mrb[20].mxu0  ;;  %v628_v55 = vadd.f32 1.0, %v1306_v46  ;;  %1319 = verf.f32 %v571_v51 }
 0x187   : > { %v1818_v56 = vadd.f32 %v491_v54, %v1765_v62  ;;  %v493_v57 = vpop.f32.mrb[21].mxu0  ;;  %879 = vmatprep.mubr.bf16.mxu1 %v685_v52  ;;  %v1310_v58 = vpop.eup %1309  ;;  %v629_v61 = vadd.f32 1.0, %v1308_v53 }
 0x188   : > { %v1822_v0 = vadd.f32 %v493_v57, %v1767_v63  ;;  %v495_v1 = vpop.f32.mrb[22].mxu0  ;;  %v1312_v2 = vpop.eup %1311  ;;  %v630_v6 = vadd.f32 1.0, %v1310_v58  ;;  %880 = vmatmul.mubr.bf16.gmra.mrb[8].mxu1 %v684_v50  ;;  %v660_v12 = vmul.f32 %v628_v55, %v532_v59 }
 0x189   : > { %v572_v7 = vmul.f32 0.70710677, %v1818_v56  ;;  %v497_v8 = vpop.f32.mrb[23].mxu0  ;;  %v631_v10 = vadd.f32 1.0, %v1312_v2  ;;  %v1828_v60 = vadd.f32 %v495_v1, %v1765_v62  ;;  %v661_v4 = vmul.f32 %v629_v61, %v533_v3 }
 0x18a   : > { %v573_v11 = vmul.f32 0.70710677, %v1822_v0  ;;  %v662_v14 = vmul.f32 %v630_v6, %v534_v5  ;;  %v1831_v16 = vadd.f32 %v497_v8, %v1767_v63  ;;  %v540_v58 = vmul.f32 0.5, %v1818_v56 }
 0x18b   : > { %1321 = verf.f32 %v572_v7  ;;  %v663_v13 = vmul.f32 %v631_v10, %v535_v9  ;;  %v574_v17 = vmul.f32 0.70710677, %v1828_v60  ;;  %v541_v3 = vmul.f32 0.5, %v1822_v0 }
 0x18c   : > { %1323 = verf.f32 %v573_v11  ;;  %v575_v18 = vmul.f32 0.70710677, %v1831_v16  ;;  %v686_v15 = vpack.c.bf16 %v662_v14, %v660_v12  ;;  %v542_v5 = vmul.f32 0.5, %v1828_v60 }
 0x18d   : > { %v1314_v19 = vpop.eup %1313  ;;  %1325 = verf.f32 %v574_v17  ;;  %v687_v22 = vpack.c.bf16 %v663_v13, %v661_v4  ;;  %v543_v9 = vmul.f32 0.5, %v1831_v16 }
 0x18e   : > { %v1316_v20 = vpop.eup %1315  ;;  %v501_v21 = vpop.f32.mrb[24].mxu0  ;;  %v632_v23 = vadd.f32 1.0, %v1314_v19  ;;  %1327 = verf.f32 %v575_v18 }
 0x18f   : > { %v1836_v24 = vadd.f32 %v501_v21, %v1765_v62  ;;  %v503_v25 = vpop.f32.mrb[25].mxu0  ;;  %v1318_v26 = vpop.eup %1317  ;;  %v633_v29 = vadd.f32 1.0, %v1316_v20  ;;  %887 = vmatprep.mubr.bf16.mxu1 %v687_v22 }
 0x190   : > { %v1840_v31 = vadd.f32 %v503_v25, %v1767_v63  ;;  %v505_v32 = vpop.f32.mrb[26].mxu0  ;;  %v1320_v33 = vpop.eup %1319  ;;  %v634_v38 = vadd.f32 1.0, %v1318_v26  ;;  %888 = vmatmul.mubr.bf16.gmra.mrb[12].mxu1 %v686_v15  ;;  %v664_v45 = vmul.f32 %v632_v23, %v536_v27 }
 0x191   : > { %v576_v39 = vmul.f32 0.70710677, %v1836_v24  ;;  %v507_v41 = vpop.f32.mrb[27].mxu0  ;;  %v635_v43 = vadd.f32 1.0, %v1320_v33  ;;  %v506_v28 = vadd.f32 %v505_v32, %v1765_v62  ;;  %v665_v48 = vmul.f32 %v633_v29, %v537_v34 }
 0x192   : > { %v577_v44 = vmul.f32 0.70710677, %v1840_v31  ;;  %v666_v30 = vmul.f32 %v634_v38, %v538_v37  ;;  %v508_v47 = vadd.f32 %v507_v41, %v1767_v63  ;;  %v544_v23 = vmul.f32 0.5, %v1836_v24 }
 0x193   : > { %1329 = verf.f32 %v576_v39  ;;  %v667_v35 = vmul.f32 %v635_v43, %v539_v42  ;;  %v578_v36 = vmul.f32 0.70710677, %v506_v28  ;;  %v546_v25 = vmul.f32 0.5, %v506_v28 }
 0x194   : > { %1331 = verf.f32 %v577_v44  ;;  %v579_v50 = vmul.f32 0.70710677, %v508_v47  ;;  %v688_v46 = vpack.c.bf16 %v666_v30, %v664_v45  ;;  %v545_v26 = vmul.f32 0.5, %v1840_v31 }
 0x195   : > { %v1322_v40 = vpop.eup %1321  ;;  %1333 = verf.f32 %v578_v36  ;;  %v689_v52 = vpack.c.bf16 %v667_v35, %v665_v48  ;;  %v547_v27 = vmul.f32 0.5, %v508_v47 }
 0x196   : > { %v1324_v51 = vpop.eup %1323  ;;  %v511_v49 = vpop.f32.mrb[28].mxu0  ;;  %v636_v53 = vadd.f32 1.0, %v1322_v40  ;;  %1335 = verf.f32 %v579_v50 }
 0x197   : > { %v512_v54 = vadd.f32 %v511_v49, %v1765_v62  ;;  %v513_v55 = vpop.f32.mrb[29].mxu0  ;;  %v1326_v57 = vpop.eup %1325  ;;  %v637_v59 = vadd.f32 1.0, %v1324_v51  ;;  %895 = vmatprep.mubr.bf16.mxu1 %v689_v52 }
 0x198   : > { %v514_v61 = vadd.f32 %v513_v55, %v1767_v63  ;;  %v515_v1 = vpop.f32.mrb[30].mxu0  ;;  %v1328_v2 = vpop.eup %1327  ;;  %v638_v6 = vadd.f32 1.0, %v1326_v57  ;;  %896 = vmatmul.mubr.bf16.gmra.mrb[16].mxu1 %v688_v46  ;;  %v668_v12 = vmul.f32 %v636_v53, %v540_v58  ;;  %v1860_v53 = vld [vmem:[%s1953_s4] ss:$0 sm:$0xff] }
 0x199   : > { %v580_v7 = vmul.f32 0.70710677, %v512_v54  ;;  %v517_v8 = vpop.f32.mrb[31].mxu0  ;;  %v639_v10 = vadd.f32 1.0, %v1328_v2  ;;  %v516_v56 = vadd.f32 %v515_v1, %v1765_v62  ;;  %v669_v13 = vmul.f32 %v637_v59, %v541_v3 }
 0x19a   : > { %v581_v11 = vmul.f32 0.70710677, %v514_v61  ;;  %v670_v14 = vmul.f32 %v638_v6, %v542_v5  ;;  %v518_v4 = vadd.f32 %v517_v8, %v1767_v63  ;;  %v548_v28 = vmul.f32 0.5, %v512_v54 }
 0x19b   : > { %1337 = verf.f32 %v580_v7  ;;  %v671_v17 = vmul.f32 %v639_v10, %v543_v9  ;;  %v582_v0 = vmul.f32 0.70710677, %v516_v56  ;;  %v550_v30 = vmul.f32 0.5, %v516_v56 }
 0x19c   : > { %1339 = verf.f32 %v581_v11  ;;  %v583_v19 = vmul.f32 0.70710677, %v518_v4  ;;  %v690_v18 = vpack.c.bf16 %v670_v14, %v668_v12  ;;  %v549_v31 = vmul.f32 0.5, %v514_v61 }
 0x19d   : > { %v1330_v60 = vpop.eup %1329  ;;  %1341 = verf.f32 %v582_v0  ;;  %v691_v20 = vpack.c.bf16 %v671_v17, %v669_v13  ;;  %v551_v47 = vmul.f32 0.5, %v518_v4 }
 0x19e   : > { %v1332_v15 = vpop.eup %1331  ;;  %v640_v16 = vadd.f32 1.0, %v1330_v60  ;;  %1343 = verf.f32 %v583_v19 }
 0x19f   : > { %v1334_v21 = vpop.eup %1333  ;;  %v641_v22 = vadd.f32 1.0, %v1332_v15  ;;  %903 = vmatprep.mubr.bf16.mxu1 %v691_v20 }
 0x1a0   : > { %v1336_v62 = vpop.eup %1335  ;;  %v642_v63 = vadd.f32 1.0, %v1334_v21  ;;  %904 = vmatmul.mubr.bf16.gmra.mrb[20].mxu1 %v690_v18  ;;  %v672_v32 = vmul.f32 %v640_v16, %v544_v23 }
 0x1a1   : > { %v643_v29 = vadd.f32 1.0, %v1336_v62  ;;  %v673_v34 = vmul.f32 %v641_v22, %v545_v26 }
 0x1a2   : > { %v674_v33 = vmul.f32 %v642_v63, %v546_v25 }
 0x1a3   : > { %v675_v37 = vmul.f32 %v643_v29, %v547_v27 }
 0x1a4   : > { %v692_v39 = vpack.c.bf16 %v674_v33, %v672_v32 }
 0x1a5   : > { %v1338_v38 = vpop.eup %1337  ;;  %v693_v42 = vpack.c.bf16 %v675_v37, %v673_v34 }
 0x1a6   : > { %v1340_v41 = vpop.eup %1339  ;;  %v644_v43 = vadd.f32 1.0, %v1338_v38 }
 0x1a7   : > { %v1342_v44 = vpop.eup %1341  ;;  %v645_v45 = vadd.f32 1.0, %v1340_v41  ;;  %911 = vmatprep.mubr.bf16.mxu1 %v693_v42 }
 0x1a8   : > { %v1344_v24 = vpop.eup %1343  ;;  %v646_v48 = vadd.f32 1.0, %v1342_v44  ;;  %912 = vmatmul.mubr.bf16.gmra.mrb[24].mxu1 %v692_v39  ;;  %v676_v36 = vmul.f32 %v644_v43, %v548_v28 }
 0x1a9   : > { %v647_v35 = vadd.f32 1.0, %v1344_v24  ;;  %v677_v50 = vmul.f32 %v645_v45, %v549_v31 }
 0x1aa   : > { %v678_v40 = vmul.f32 %v646_v48, %v550_v30 }
 0x1ab   : > { %v679_v46 = vmul.f32 %v647_v35, %v551_v47 }
 0x1ac   : > { %v694_v51 = vpack.c.bf16 %v678_v40, %v676_v36 }
 0x1ad   : > { %v695_v49 = vpack.c.bf16 %v679_v46, %v677_v50 }
 0x1af   : > { %919 = vmatprep.mubr.bf16.mxu1 %v695_v49 }
 0x1b0   : > { %920 = vmatmul.mubr.bf16.gmra.mrb[28].mxu1 %v694_v51 }
 0x24b   : > { %v1119_v52 = vpop.f32.mrb[0].mxu1 }
 0x24c   : > { %v1120_v54 = vpop.f32.mrb[1].mxu1 }
 0x24d   : > { %v1121_v55 = vadd.f32 %v1120_v54, %v1119_v52  ;;  %v1122_v57 = vpop.f32.mrb[2].mxu1 }
 0x24e   : > { %v1123_v58 = vpop.f32.mrb[3].mxu1 }
 0x24f   : > { %v866_v59 = vadd.f32 %v1121_v55, %v1860_v53  ;;  %v1124_v61 = vadd.f32 %v1123_v58, %v1122_v57 }
 0x251   : > { %928 = vst [vmem:[%s1865_s28] sm:$0xff] %v866_v59  ;;  %v869_v1 = vadd.f32 %v1124_v61, %v1860_v53 }
 0x253   : > { %929 = vst [vmem:[%s1865_s28 + $0x8] sm:$0xff] %v869_v1  ;;  %v1125_v2 = vpop.f32.mrb[4].mxu1 }
 0x254   : > { %v1126_v3 = vpop.f32.mrb[5].mxu1 }
 0x255   : > { %v1127_v5 = vadd.f32 %v1126_v3, %v1125_v2  ;;  %v1128_v6 = vpop.f32.mrb[6].mxu1 }
 0x256   : > { %v1129_v7 = vpop.f32.mrb[7].mxu1 }
 0x257   : > { %v874_v8 = vadd.f32 %v1127_v5, %v1860_v53  ;;  %v1130_v9 = vadd.f32 %v1129_v7, %v1128_v6 }
 0x259   : > { %930 = vst [vmem:[%s1865_s28 + $0x10] sm:$0xff] %v874_v8  ;;  %v877_v10 = vadd.f32 %v1130_v9, %v1860_v53 }
 0x25b   : > { %931 = vst [vmem:[%s1865_s28 + $0x18] sm:$0xff] %v877_v10  ;;  %v1131_v11 = vpop.f32.mrb[8].mxu1 }
 0x25c   : > { %v1132_v56 = vpop.f32.mrb[9].mxu1 }
 0x25d   : > { %v1133_v12 = vadd.f32 %v1132_v56, %v1131_v11  ;;  %v1134_v14 = vpop.f32.mrb[10].mxu1 }
 0x25e   : > { %v1135_v4 = vpop.f32.mrb[11].mxu1 }
 0x25f   : > { %v882_v13 = vadd.f32 %v1133_v12, %v1860_v53  ;;  %v1136_v17 = vadd.f32 %v1135_v4, %v1134_v14 }
 0x261   : > { %932 = vst [vmem:[%s1865_s28 + $0x20] sm:$0xff] %v882_v13  ;;  %v885_v0 = vadd.f32 %v1136_v17, %v1860_v53 }
 0x263   : > { %933 = vst [vmem:[%s1865_s28 + $0x28] sm:$0xff] %v885_v0  ;;  %v1137_v60 = vpop.f32.mrb[12].mxu1 }
 0x264   : > { %v1138_v19 = vpop.f32.mrb[13].mxu1 }
 0x265   : > { %v1139_v18 = vadd.f32 %v1138_v19, %v1137_v60  ;;  %v1140_v15 = vpop.f32.mrb[14].mxu1 }
 0x266   : > { %v1141_v20 = vpop.f32.mrb[15].mxu1 }
 0x267   : > { %v890_v16 = vadd.f32 %v1139_v18, %v1860_v53  ;;  %v1142_v21 = vadd.f32 %v1141_v20, %v1140_v15 }
 0x269   : > { %934 = vst [vmem:[%s1865_s28 + $0x30] sm:$0xff] %v890_v16  ;;  %v893_v22 = vadd.f32 %v1142_v21, %v1860_v53 }
 0x26b   : > { %935 = vst [vmem:[%s1865_s28 + $0x38] sm:$0xff] %v893_v22  ;;  %v1143_v62 = vpop.f32.mrb[16].mxu1 }
 0x26c   : > { %v1144_v23 = vpop.f32.mrb[17].mxu1 }
 0x26d   : > { %v1145_v25 = vadd.f32 %v1144_v23, %v1143_v62  ;;  %v1146_v63 = vpop.f32.mrb[18].mxu1 }
 0x26e   : > { %v1147_v26 = vpop.f32.mrb[19].mxu1 }
 0x26f   : > { %v898_v27 = vadd.f32 %v1145_v25, %v1860_v53  ;;  %v1148_v29 = vadd.f32 %v1147_v26, %v1146_v63 }
 0x271   : > { %936 = vst [vmem:[%s1865_s28 + $0x40] sm:$0xff] %v898_v27  ;;  %v901_v32 = vadd.f32 %v1148_v29, %v1860_v53 }
 0x273   : > { %937 = vst [vmem:[%s1865_s28 + $0x48] sm:$0xff] %v901_v32  ;;  %v1149_v33 = vpop.f32.mrb[20].mxu1 }
 0x274   : > { %v1150_v34 = vpop.f32.mrb[21].mxu1 }
 0x275   : > { %v1151_v37 = vadd.f32 %v1150_v34, %v1149_v33  ;;  %v1152_v38 = vpop.f32.mrb[22].mxu1 }
 0x276   : > { %v1153_v39 = vpop.f32.mrb[23].mxu1 }
 0x277   : > { %v906_v41 = vadd.f32 %v1151_v37, %v1860_v53  ;;  %v1154_v42 = vadd.f32 %v1153_v39, %v1152_v38 }
 0x279   : > { %938 = vst [vmem:[%s1865_s28 + $0x50] sm:$0xff] %v906_v41  ;;  %v909_v43 = vadd.f32 %v1154_v42, %v1860_v53 }
 0x27b   : > { %939 = vst [vmem:[%s1865_s28 + $0x58] sm:$0xff] %v909_v43  ;;  %v1155_v44 = vpop.f32.mrb[24].mxu1 }
 0x27c   : > { %v1156_v45 = vpop.f32.mrb[25].mxu1 }
 0x27d   : > { %v1157_v24 = vadd.f32 %v1156_v45, %v1155_v44  ;;  %v1158_v28 = vpop.f32.mrb[26].mxu1 }
 0x27e   : > { %v1159_v30 = vpop.f32.mrb[27].mxu1 }
 0x27f   : > { %v914_v48 = vadd.f32 %v1157_v24, %v1860_v53  ;;  %v1160_v31 = vadd.f32 %v1159_v30, %v1158_v28 }
 0x281   : > { %940 = vst [vmem:[%s1865_s28 + $0x60] sm:$0xff] %v914_v48  ;;  %v917_v47 = vadd.f32 %v1160_v31, %v1860_v53 }
 0x283   : > { %941 = vst [vmem:[%s1865_s28 + $0x68] sm:$0xff] %v917_v47  ;;  %v1161_v35 = vpop.f32.mrb[28].mxu1 }
 0x284   : > { %v1162_v36 = vpop.f32.mrb[29].mxu1 }
 0x285   : > { %v1163_v40 = vadd.f32 %v1162_v36, %v1161_v35  ;;  %v1164_v50 = vpop.f32.mrb[30].mxu1 }
 0x286   : > { %v1165_v46 = vpop.f32.mrb[31].mxu1 }
 0x287   : > { %v922_v51 = vadd.f32 %v1163_v40, %v1860_v53  ;;  %v1166_v49 = vadd.f32 %v1165_v46, %v1164_v50 }
 0x289   : > { %942 = vst [vmem:[%s1865_s28 + $0x70] sm:$0xff] %v922_v51  ;;  %v925_v52 = vadd.f32 %v1166_v49, %v1860_v53 }
 0x28b   : > { %943 = vst [vmem:[%s1865_s28 + $0x78] sm:$0xff] %v925_v52 }
 0x28c   : > { %1444 = shalt.err (!%p1441_p1)
}
 0x28d   : > { %s1445_s14 = scalar_lea.hbm %s1900_s12, 2048  ;;  %s1449_s15 = scalar_lea.hbm %s1954_s5, 4096 }
 0x28e   : > { %p1446_p13 = scmp.ne.s32.totalorder %s1900_s12, %s1445_s14  ;;  %p1450_p4 = scmp.lt.u32.totalorder %s1900_s12, %s1954_s5 }
 0x28f   : > { %p1451_p7 = scmp.lt.u32.totalorder %s1449_s15, %s1445_s14  ;;  %p1453_p11 = scmp.lt.u32.totalorder %s1445_s14, %s1900_s12 }
 0x290   : > { %p1447_p6 = pnand %p1446_p13, %p1968_p0 }
 0x291   : > { %p1452_p8 = por %p1451_p7, %p1450_p4 }
 0x292   : > { %p1448_p10 = pneg %p1447_p6 }
 0x293   : > { %p1454_p2 = por %p1453_p11, %p1452_p8 }
 0x295   : > { %p1455_p3 = pnand %p1454_p2, %p1448_p10 }
 0x297   : > { %1458 = shalt.err (!%p1455_p3)
}
 0x298   : > { %s1512_s13 = smov 128   ;;  %s1513_s11 = smov 8  }
 0x299   : > { %1177 = dma.vmem_to_hbm [thread:$0]  (%p1968_p0), %s1902_s17, 2048, %s1900_s12, %s945_s22, %s1512_s13, %s1512_s13, %s1513_s11  }
 0x29a PF: > { %s973_s29 = sand.u32 1, %s1489_s18   ;;  %p1969_p5 = scmp.ne.s32.totalorder %s1959_s25, 0 }
 0x29b   : > { %p1970_p9 = scmp.ge.s32.totalorder %s1501_s21, 2  ;;  %s974_s30 = scalar_lea.sflag [#allocation4], %s973_s29 }
 0x29d   : > { %p1191_p12 = pnand %p1970_p9, %p1969_p5 }
 0x29f   : > { %1484 = dma.done.wait (!%p1191_p12), %s974_s30, 2048  }
 0x2a0   : > { %1486 = vsyncadd (!%p1191_p12), %s974_s30, 4294965248  ;;  %p19_p1 = scmp.ge.s32.totalorder %s1657_s23, 4   ;;  %s1971_s18 = smov %s1493_s19 }
 0x2a1   : > { %s1972_s19 = smov %s1497_s20  ;;  %s1973_s20 = smov %s1666_s7 }
 0x2a2   : > { %s1974_s21 = smov %s1657_s23  ;;  %21 = sbr.rel (!%p19_p1) target bundleno = 6 (0x6), region = 93 }
 0x2a9   :  { %979 = vsyncpa [#allocation3], 1 }
 0x2aa   :  { %981 = vsyncpa [#allocation3 + $0x1], 1 }
 0x2ab   :  { %982 = vsyncpa [#allocation6], 1 }
 0x2ac   :  { %983 = vsyncpa [#allocation4], 1 }
 0x2ad   :  { %985 = vsyncpa [#allocation4 + $0x1], 1 }

// kernel: tpu_custom_call.1
= control target key start
LH: loop header
LB: loop body
LE: loop exit
PB: predicated region body
PF: predicated region fallthrough
CT: control target
= control target key end

     0   :  { %10 = vsyncpa [#allocation3], 0  ;;  %s1949_s0 = inlined_call_operand.hbm [shape: f32[256,128], index: 0, kind: input, shape index: {}]   ;;  %s1950_s1 = inlined_call_operand.hbm [shape: bf16[128,256], index: 1, kind: input, shape index: {}]   ;;  %s1951_s2 = inlined_call_operand.vmem [shape: f32[1,256], index: 2, kind: input, shape index: {}]   ;;  %s1952_s3 = inlined_call_operand.hbm [shape: bf16[256,128], index: 3, kind: input, shape index: {}]   ;;  %s1953_s4 = inlined_call_operand.vmem [shape: f32[1,128], index: 4, kind: input, shape index: {}]   ;;  %s1954_s5 = inlined_call_operand.hbm [shape: f32[256,128], index: 5, kind: output, shape index: {}]  }
   0x1   :  { %12 = vsyncpa [#allocation3 + $0x1], 0 }
   0x2   :  { %13 = vsyncpa [#allocation6], 0 }
   0x3   :  { %14 = vsyncpa [#allocation4], 0 }
   0x4   :  { %16 = vsyncpa [#allocation4 + $0x1], 0  ;;  %s1544_s18 = smov 0   ;;  %s1546_s19 = smov 0  }
   0x5   :  { %s1548_s20 = smov 0   ;;  %s1550_s21 = smov 0  }
   0x6 LB: > { %s1565_s22 = sadd.s32 4294967295, %s1501_s21   ;;  %s1050_s23 = sadd.s32 4294967294, %s1501_s21   ;;  %s1501_s21 = sphi %s1550_s21, %s1974_s21   ;;  %s1497_s20 = sphi %s1548_s20, %s1973_s20   ;;  %s1493_s19 = sphi %s1546_s19, %s1972_s19   ;;  %s1489_s18 = sphi %s1544_s18, %s1971_s18  }
   0x7   : > { %p42_p0 = scmp.ne.s32.totalorder %s1493_s19, %s1489_s18  ;;  %p1955_p1 = scmp.eq.s32.totalorder %s1565_s22, 0 }
   0x8   : > { %p156_p3 = scmp.eq.s32.totalorder %s1050_s23, 1  ;;  %p1051_p5 = scmp.ge.s32.totalorder %s1501_s21, 1 }
   0x9   : > { %p1574_p4 = por %p1955_p1, %p42_p0  ;;  %p163_p7 = scmp.lt.s32.totalorder %s1501_s21, 3 }
   0xa   : > { %p1579_p6 = por %p156_p3, %p42_p0  ;;  %s1503_s27 = smov [#allocation5]  }
   0xb   : > { %s1958_s24 = scalar_select %p1574_p4, 1, 0 }
   0xc   : > { %s1959_s25 = scalar_select %p1579_p6, 1, 0 }
   0xd   : > { %p1584_p8 = pnand %p1051_p5, %p163_p7  ;;  %s175_s28 = sshll.u32 %s1503_s27, 4  ;;  %s1588_s28 = int_to_ptr.vmem [resolvable:$true] %s175_s28 }
   0xe   : > { %s1504_s30 = smov [#allocation7]   ;;  %s1345_s9 = scalar_lea.hbm %s1950_s1, 2048 }
   0xf   : > { %p1179_p9 = pneg %p1584_p8  ;;  %s191_s6 = sshll.u32 %s1504_s30, 4  ;;  %s1599_s6 = int_to_ptr.vmem [resolvable:$true] %s191_s6 }
  0x10   : > { %p1346_p12 = scmp.ne.s32.totalorder %s1950_s1, %s1345_s9  ;;  %p1352_p5 = scmp.lt.u32.totalorder %s1345_s9, %s1950_s1 }
  0x11   : > { %p1595_p11 = pnand %p1179_p9, %p1955_p1 }
  0x13   : > { %p1347_p13 = pneg %p1595_p11 }
  0x15   : > { %p1348_p0 = pnand %p1347_p13, %p1346_p12 }
  0x17   : > { %p1349_p3 = pneg %p1348_p0 }
  0x19   : > { %p1354_p7 = pnand %p1352_p5, %p1349_p3 }
  0x1b   : > { %1357 = shalt.err (!%p1354_p7)
}
  0x1c   : > { %s1358_s14 = scalar_lea.vmem %s1588_s28, 2048  ;;  %p1366_p2 = scmp.lt.s32.totalorder %s1588_s28, %s1588_s28 }
  0x1d   : > { %p1359_p9 = scmp.ne.s32.totalorder %s1588_s28, %s1358_s14  ;;  %p1367_p12 = scmp.lt.s32.totalorder %s1358_s14, %s1358_s14 }
  0x1f   : > { %p1361_p10 = pnand %p1359_p9, %p1347_p13  ;;  %p1368_p0 = por %p1367_p12, %p1366_p2 }
  0x21   : > { %p1362_p1 = pneg %p1361_p10 }
  0x23   : > { %p1369_p6 = pnand %p1368_p0, %p1362_p1 }
  0x25   : > { %1372 = shalt.err (!%p1369_p6)
}
  0x26   : > { %s1505_s15 = smov 128   ;;  %s1506_s16 = smov 8  }
  0x27   : > { %1182 = dma.hbm_to_vmem [thread:$0]  (!%p1595_p11), %s1950_s1, 2048, %s1588_s28, [#allocation6], %s1505_s15, %s1505_s15, %s1506_s16  }
  0x28   : > { %s1373_s7 = scalar_lea.hbm %s1952_s3, 2048 }
  0x29   : > { %p1374_p1 = scmp.ne.s32.totalorder %s1952_s3, %s1373_s7  ;;  %p1380_p10 = scmp.lt.u32.totalorder %s1373_s7, %s1952_s3 }
  0x2b   : > { %p1376_p2 = pnand %p1374_p1, %p1347_p13 }
  0x2d   : > { %p1377_p6 = pneg %p1376_p2 }
  0x2f   : > { %p1382_p3 = pnand %p1380_p10, %p1377_p6 }
  0x31   : > { %1385 = shalt.err (!%p1382_p3)
}
  0x32   : > { %s1386_s28 = scalar_lea.vmem %s1599_s6, 2048  ;;  %p1394_p12 = scmp.lt.s32.totalorder %s1599_s6, %s1599_s6 }
  0x33   : > { %p1387_p5 = scmp.ne.s32.totalorder %s1599_s6, %s1386_s28  ;;  %p1395_p0 = scmp.lt.s32.totalorder %s1386_s28, %s1386_s28 }
  0x35   : > { %p1389_p7 = pnand %p1387_p5, %p1347_p13  ;;  %p1396_p1 = por %p1395_p0, %p1394_p12 }
  0x37   : > { %p1390_p9 = pneg %p1389_p7 }
  0x39   : > { %p1397_p2 = pnand %p1396_p1, %p1390_p9 }
  0x3b   : > { %1400 = shalt.err (!%p1397_p2)
}
  0x3c   : > { %s1507_s12 = smov 64   ;;  %s1508_s13 = smov 4  }
  0x3d   : > { %1185 = dma.hbm_to_vmem [thread:$0]  (!%p1595_p11), %s1952_s3, 2048, %s1599_s6, [#allocation6], %s1507_s12, %s1507_s12, %s1508_s13  }
  0x3e   : > { %s1657_s23 = sadd.s32 1, %s1501_s21   ;;  %s29_s30 = sadd.s32 1, %s1497_s20 }
  0x3f   : > { %s26_s27 = ssub.s32 %s1501_s21, %s1657_s23  ;;  %p36_p6 = scmp.ne.s32.totalorder %s1497_s20, %s1493_s19 }
  0x40   : > { %p27_p13 = scmp.eq.s32.totalorder %s26_s27, 0  ;;  %p37_p10 = scmp.eq.s32.totalorder %s1501_s21, 0 }
  0x41   : > { %p1962_p5 = scmp.eq.s32.totalorder %s1565_s22, 1  ;;  %p1196_p9 = scmp.lt.s32.totalorder %s1501_s21, 2 }
  0x42   : > { %s1666_s7 = scalar_select %p27_p13, %s1497_s20, %s29_s30  }
  0x43   : > { %p38_p3 = por %p37_p10, %p36_p6  ;;  %p1670_p7 = por %p1962_p5, %p36_p6 }
  0x44   : > { %s208_s29 = sand.u32 1, %s1497_s20   ;;  %s1101_s6 = sshll.u32 %s1501_s21, 11 }
  0x45   : > { %s1963_s8 = scalar_select %p1670_p7, 1, 0 }
  0x46   : > { %s1055_s9 = sshll.u32 %s208_s29, 7  ;;  %s1680_s28 = scalar_lea.hbm %s1949_s0, %s1101_s6 }
  0x47   : > { %s212_s12 = scalar_lea.vmem [#allocation2], %s1055_s9  ;;  %p1684_p11 = pnand %p1196_p9, %p38_p3 }
  0x48   : > { %s219_s13 = sshll.u32 %s212_s12, 4  ;;  %s1688_s17 = scalar_lea.sflag [#allocation3], %s208_s29  ;;  %s1682_s13 = int_to_ptr.vmem [resolvable:$true] %s219_s13 }
  0x49   : > { %s1401_s27 = scalar_lea.hbm %s1680_s28, 2048  ;;  %p1403_p0 = pneg %p1684_p11 }
  0x4a   : > { %p1402_p12 = scmp.ne.s32.totalorder %s1680_s28, %s1401_s27  ;;  %s1406_s6 = scalar_lea.hbm %s1949_s0, 4096 }
  0x4b   : > { %p1407_p13 = scmp.lt.u32.totalorder %s1680_s28, %s1949_s0  ;;  %p1408_p6 = scmp.lt.u32.totalorder %s1406_s6, %s1401_s27 }
  0x4c   : > { %p1404_p1 = pnand %p1403_p0, %p1402_p12  ;;  %p1410_p3 = scmp.lt.u32.totalorder %s1401_s27, %s1680_s28 }
  0x4d   : > { %p1409_p10 = por %p1408_p6, %p1407_p13 }
  0x4e   : > { %p1405_p2 = pneg %p1404_p1 }
  0x4f   : > { %p1411_p5 = por %p1410_p3, %p1409_p10 }
  0x51   : > { %p1412_p9 = pnand %p1411_p5, %p1405_p2 }
  0x53   : > { %1415 = shalt.err (!%p1412_p9)
}
  0x54   : > { %s1416_s29 = scalar_lea.vmem %s1682_s13, 2048  ;;  %s1509_s12 = smov [#allocation2]  }
  0x55   : > { %p1417_p12 = scmp.ne.s32.totalorder %s1682_s13, %s1416_s29  ;;  %s1421_s30 = sshll.u32 %s1509_s12, 4  ;;  %s1422_s30 = int_to_ptr.vmem [resolvable:$false] %s1421_s30 }
  0x56   : > { %s1423_s9 = scalar_lea.vmem %s1422_s30, 4096  ;;  %p1424_p4 = scmp.lt.s32.totalorder %s1682_s13, %s1422_s30 }
  0x57   : > { %p1419_p1 = pnand %p1417_p12, %p1403_p0  ;;  %p1425_p13 = scmp.lt.s32.totalorder %s1423_s9, %s1416_s29 }
  0x59   : > { %p1420_p7 = pneg %p1419_p1  ;;  %p1426_p6 = por %p1425_p13, %p1424_p4 }
  0x5b   : > { %p1427_p10 = pnand %p1426_p6, %p1420_p7 }
  0x5d   : > { %1430 = shalt.err (!%p1427_p10)
}
  0x5e   : > { %1189 = dma.hbm_to_vmem [thread:$0]  (!%p1684_p11), %s1680_s28, 2048, %s1682_s13, %s1688_s17, %s1505_s15, %s1505_s15, %s1506_s16  }
  0x5f   : > { %231 = sbr.rel (%p1584_p8) target bundleno = 666 (0x29a), region = 40  ;;  %s1722_s27 = sand.u32 (!%p1584_p8), 1, %s1493_s19  }
  0x60   : > { %s1059_s6 = sshll.u32 (!%p1584_p8), %s1722_s27, 7  ;;  %s234_s10 = scalar_lea.sflag (!%p1584_p8), [#allocation3], %s1722_s27 }
  0x61   : > { %s1728_s14 = scalar_lea.vmem (!%p1584_p8), [#allocation2], %s1059_s6  ;;  %p1965_p4 = scmp.ne.s32.totalorder (!%p1584_p8), %s1958_s24, 0 }
  0x66   : > { %1476 = dma.done.wait (%p1965_p4), %s234_s10, 2048  }
  0x67   : > { %1478 = vsyncadd (%p1965_p4), %s234_s10, 4294965248  ;;  %p1966_p7 = scmp.eq.s32.totalorder %s1565_s22, 0 }
  0x69   : > { %1480 = dma.done.wait (%p1966_p7), [#allocation6], 4096   ;;  %p1967_p8 = pmov %p1966_p7 }
  0x6a   : > { %v1510_v0 = vmov 0   ;;  %v1241_v1 = vld [vmem:[#allocation5 + $0x4] ss:$8 sps:$4 sm:$0xff]   ;;  %v1243_v2 = vld [vmem:[#allocation5] ss:$8 sps:$4 sm:$0xff]   ;;  %v277_v24 = vld [vmem:[%s1728_s14 + $0x10] sm:$0xff]  ;;  %v317_v57 = vlaneseq }
  0x6b   : > { %1482 = vsyncadd (%p1967_p8), [#allocation6], 4294963200  ;;  %439 = vmatprep.mubr.bf16.mxu0 %v1510_v0  ;;  %407 = vmatprep.subr.bf16.mxu0 %v1241_v1  ;;  %v1244_v3 = vld [vmem:[#allocation5 + $0x14] ss:$8 sps:$4 sm:$0xff]   ;;  %v1246_v4 = vld [vmem:[#allocation5 + $0x10] ss:$8 sps:$4 sm:$0xff]  }
  0x6c   : > { %408 = vmatpush1.bf16.msra.mxu0 %v1243_v2  ;;  %v1247_v5 = vld [vmem:[#allocation5 + $0x24] ss:$8 sps:$4 sm:$0xff]   ;;  %v1249_v6 = vld [vmem:[#allocation5 + $0x20] ss:$8 sps:$4 sm:$0xff]   ;;  %v1250_v7 = vld [vmem:[#allocation5 + $0x34] ss:$8 sps:$4 sm:$0xff]  }
  0x6d   : > { %409 = vmatprep.subr.bf16.mxu0 %v1244_v3  ;;  %v1252_v8 = vld [vmem:[#allocation5 + $0x30] ss:$8 sps:$4 sm:$0xff]   ;;  %v1253_v9 = vld [vmem:[#allocation5 + $0x44] ss:$8 sps:$4 sm:$0xff]   ;;  %v1255_v10 = vld [vmem:[#allocation5 + $0x40] ss:$8 sps:$4 sm:$0xff]  }
  0x6e   : > { %v1256_v11 = vld [vmem:[#allocation5 + $0x54] ss:$8 sps:$4 sm:$0xff]   ;;  %v1265_v12 = vld [vmem:[#allocation7 + $0x40] sm:$0xff]   ;;  %v1258_v13 = vld [vmem:[#allocation5 + $0x50] ss:$8 sps:$4 sm:$0xff]   ;;  %v318_v58 = vshrl.u32 %v317_v57, 7 }
  0x6f   : > { %v1266_v14 = vld [vmem:[#allocation7] sm:$0xff]   ;;  %1103 = vmatprep.subr.bf16.mxu1 %v1265_v12  ;;  %v1267_v15 = vld [vmem:[#allocation7 + $0x48] sm:$0xff]   ;;  %v1262_v19 = vld [vmem:[#allocation5 + $0x74] ss:$8 sps:$4 sm:$0xff]   ;;  %s1865_s28 = scalar_lea.vmem [#allocation8], %s1059_s6  ;;  %s1102_s13 = sshll.u32 %s1565_s22, 11 }
  0x70   : > { %410 = vmatpush1.bf16.msra.mxu0 %v1246_v4  ;;  %1104 = vmatpush3.bf16.msra.mxu1 %v1266_v14  ;;  %v1268_v16 = vld [vmem:[#allocation7 + $0x8] sm:$0xff]   ;;  %v1264_v20 = vld [vmem:[#allocation5 + $0x70] ss:$8 sps:$4 sm:$0xff]   ;;  %v275_v21 = vld [vmem:[%s1728_s14] sm:$0xff]  ;;  %v319_v59 = vsub.s32 0, %v318_v58  ;;  %v323_v61 = vsub.s32 1, %v318_v58  ;;  %s1900_s12 = scalar_lea.hbm %s1954_s5, %s1102_s13 }
  0x71   : > { %411 = vmatprep.subr.bf16.mxu0 %v1247_v5  ;;  %v1259_v17 = vld [vmem:[#allocation5 + $0x64] ss:$8 sps:$4 sm:$0xff]   ;;  %1105 = vmatprep.subr.bf16.mxu1 %v1267_v15  ;;  %v1261_v18 = vld [vmem:[#allocation5 + $0x60] ss:$8 sps:$4 sm:$0xff]   ;;  %v278_v25 = vld [vmem:[%s1728_s14 + $0x18] sm:$0xff]  ;;  %s958_s17 = sshll.u32 %s1865_s28, 4  ;;  %s1902_s17 = int_to_ptr.vmem [resolvable:$true] %s958_s17 }
  0x72   : > { %v276_v22 = vld [vmem:[%s1728_s14 + $0x8] sm:$0xff]  ;;  %v292_v26 = vpack.c.bf16 %v278_v25, %v277_v24  ;;  %v279_v27 = vld [vmem:[%s1728_s14 + $0x20] sm:$0xff]  ;;  %v281_v30 = vld [vmem:[%s1728_s14 + $0x30] sm:$0xff]  ;;  %s945_s22 = scalar_lea.sflag [#allocation4], %s1722_s27  ;;  %s1431_s30 = scalar_lea.vmem %s1902_s17, 2048 }
  0x73   : > { %v291_v23 = vpack.c.bf16 %v276_v22, %v275_v21  ;;  %v280_v28 = vld [vmem:[%s1728_s14 + $0x28] sm:$0xff]  ;;  %v282_v31 = vld [vmem:[%s1728_s14 + $0x38] sm:$0xff]  ;;  %v283_v33 = vld [vmem:[%s1728_s14 + $0x40] sm:$0xff]  ;;  %p1432_p11 = scmp.ne.s32.totalorder %s1902_s17, %s1431_s30  ;;  %p1968_p0 = scmp.ne.s32.totalorder %s1963_s8, 0 }
  0x74   : > { %412 = vmatpush1.bf16.msra.mxu0 %v1249_v6  ;;  %1106 = vmatpush3.bf16.msra.mxu1 %v1268_v16  ;;  %v293_v29 = vpack.c.bf16 %v280_v28, %v279_v27  ;;  %v294_v32 = vpack.c.bf16 %v282_v31, %v281_v30  ;;  %v284_v34 = vld [vmem:[%s1728_s14 + $0x48] sm:$0xff]  ;;  %v285_v36 = vld [vmem:[%s1728_s14 + $0x50] sm:$0xff]  ;;  %v286_v37 = vld [vmem:[%s1728_s14 + $0x58] sm:$0xff]  ;;  %s1511_s9 = smov [#allocation8]  }
  0x75   : > { %413 = vmatprep.subr.bf16.mxu0 %v1250_v7  ;;  %v295_v35 = vpack.c.bf16 %v284_v34, %v283_v33  ;;  %v296_v38 = vpack.c.bf16 %v286_v37, %v285_v36  ;;  %v287_v39 = vld [vmem:[%s1728_s14 + $0x60] sm:$0xff]  ;;  %v288_v40 = vld [vmem:[%s1728_s14 + $0x68] sm:$0xff]  ;;  %v289_v42 = vld [vmem:[%s1728_s14 + $0x70] sm:$0xff]  ;;  %p1433_p2 = pnand %p1432_p11, %p1968_p0  ;;  %s1435_s6 = sshll.u32 %s1511_s9, 4  ;;  %s1436_s6 = int_to_ptr.vmem [resolvable:$false] %s1435_s6 }
  0x76   : > { %v297_v41 = vpack.c.bf16 %v288_v40, %v287_v39  ;;  %v290_v43 = vld [vmem:[%s1728_s14 + $0x78] sm:$0xff]  ;;  %v1269_v45 = vld [vmem:[#allocation7 + $0x50] sm:$0xff]   ;;  %v1273_v49 = vld [vmem:[#allocation7 + $0x60] sm:$0xff]   ;;  %s1437_s10 = scalar_lea.vmem %s1436_s6, 4096  ;;  %p1438_p5 = scmp.lt.s32.totalorder %s1902_s17, %s1436_s6 }
  0x77   : > { %v298_v44 = vpack.c.bf16 %v290_v43, %v289_v42  ;;  %v1270_v46 = vld [vmem:[#allocation7 + $0x10] sm:$0xff]   ;;  %1107 = vmatprep.subr.bf16.mxu1 %v1269_v45  ;;  %v1271_v47 = vld [vmem:[#allocation7 + $0x58] sm:$0xff]   ;;  %v1274_v50 = vld [vmem:[#allocation7 + $0x20] sm:$0xff]   ;;  %p1434_p3 = pneg %p1433_p2  ;;  %p1439_p9 = scmp.lt.s32.totalorder %s1437_s10, %s1431_s30 }
  0x78   : > { %414 = vmatpush1.bf16.msra.mxu0 %v1252_v8  ;;  %1108 = vmatpush3.bf16.msra.mxu1 %v1270_v46  ;;  %v1272_v48 = vld [vmem:[#allocation7 + $0x18] sm:$0xff]   ;;  %v1275_v51 = vld [vmem:[#allocation7 + $0x68] sm:$0xff]   ;;  %v1277_v53 = vld [vmem:[#allocation7 + $0x70] sm:$0xff]  }
  0x79   : > { %415 = vmatprep.subr.bf16.mxu0 %v1253_v9  ;;  %1109 = vmatprep.subr.bf16.mxu1 %v1271_v47  ;;  %v1276_v52 = vld [vmem:[#allocation7 + $0x28] sm:$0xff]   ;;  %v1278_v54 = vld [vmem:[#allocation7 + $0x30] sm:$0xff]   ;;  %v1279_v55 = vld [vmem:[#allocation7 + $0x78] sm:$0xff]   ;;  %p1440_p12 = por %p1439_p9, %p1438_p5 }
  0x7a   : > { %v1280_v56 = vld [vmem:[#allocation7 + $0x38] sm:$0xff]   ;;  %v315_v60 = vld [vmem:[%s1951_s2] sm:$0x3] }
  0x7b   : > { %v1765_v62 = vrot.slane %v315_v60, %v319_v59  ;;  %v1767_v63 = vrot.slane %v315_v60, %v323_v61  ;;  %p1441_p1 = pnand %p1440_p12, %p1434_p3 }
  0x7c   : > { %416 = vmatpush1.bf16.msra.mxu0 %v1255_v10  ;;  %1110 = vmatpush3.bf16.msra.mxu1 %v1272_v48 }
  0x7d   : > { %417 = vmatprep.subr.bf16.mxu0 %v1256_v11  ;;  %1111 = vmatprep.subr.bf16.mxu1 %v1273_v49 }
  0x80   : > { %418 = vmatpush1.bf16.msra.mxu0 %v1258_v13  ;;  %1112 = vmatpush3.bf16.msra.mxu1 %v1274_v50 }
  0x81   : > { %419 = vmatprep.subr.bf16.mxu0 %v1259_v17  ;;  %1113 = vmatprep.subr.bf16.mxu1 %v1275_v51 }
  0x84   : > { %420 = vmatpush1.bf16.msra.mxu0 %v1261_v18  ;;  %1114 = vmatpush3.bf16.msra.mxu1 %v1276_v52 }
  0x85   : > { %421 = vmatprep.subr.bf16.mxu0 %v1262_v19  ;;  %1115 = vmatprep.subr.bf16.mxu1 %v1277_v53 }
  0x88   : > { %422 = vmatpush1.bf16.msra.mxu0 %v1264_v20  ;;  %1116 = vmatpush3.bf16.msra.mxu1 %v1278_v54 }
  0x89   : > { %1117 = vmatprep.subr.bf16.mxu1 %v1279_v55 }
  0x8b   : > { %440 = vmatmul.mubr.bf16.vlgmr.msra.gmra.mrb[0].mxu0 %v291_v23 }
  0x8c   : > { %449 = vmatprep.mubr.bf16.mxu0 %v1510_v0  ;;  %1118 = vmatpush3.bf16.msra.mxu1 %v1280_v56 }
  0x93   : > { %450 = vmatmul.mubr.bf16.gmra.mrb[4].mxu0 %v292_v26 }
  0x94   : > { %459 = vmatprep.mubr.bf16.mxu0 %v1510_v0 }
  0x9b   : > { %460 = vmatmul.mubr.bf16.gmra.mrb[8].mxu0 %v293_v29 }
  0x9c   : > { %469 = vmatprep.mubr.bf16.mxu0 %v1510_v0 }
  0xa3   : > { %470 = vmatmul.mubr.bf16.gmra.mrb[12].mxu0 %v294_v32 }
  0xa4   : > { %479 = vmatprep.mubr.bf16.mxu0 %v1510_v0 }
  0xab   : > { %480 = vmatmul.mubr.bf16.gmra.mrb[16].mxu0 %v295_v35 }
  0xac   : > { %489 = vmatprep.mubr.bf16.mxu0 %v1510_v0 }
  0xb3   : > { %490 = vmatmul.mubr.bf16.gmra.mrb[20].mxu0 %v296_v38 }
  0xb4   : > { %499 = vmatprep.mubr.bf16.mxu0 %v1510_v0 }
  0xbb   : > { %500 = vmatmul.mubr.bf16.gmra.mrb[24].mxu0 %v297_v41 }
  0xbc   : > { %509 = vmatprep.mubr.bf16.mxu0 %v1510_v0 }
  0xc3   : > { %510 = vmatmul.mubr.bf16.gmra.mrb[28].mxu0 %v298_v44 }
 0x15e   : > { %v441_v0 = vpop.f32.mrb[0].mxu0 }
 0x15f   : > { %v442_v1 = vadd.f32 %v441_v0, %v1765_v62  ;;  %v443_v2 = vpop.f32.mrb[1].mxu0 }
 0x160   : > { %v444_v3 = vadd.f32 %v443_v2, %v1767_v63  ;;  %v445_v4 = vpop.f32.mrb[2].mxu0 }
 0x161   : > { %v552_v5 = vmul.f32 0.70710677, %v442_v1  ;;  %v446_v6 = vadd.f32 %v445_v4, %v1765_v62  ;;  %v447_v7 = vpop.f32.mrb[3].mxu0  ;;  %v520_v28 = vmul.f32 0.5, %v442_v1 }
 0x162   : > { %v553_v8 = vmul.f32 0.70710677, %v444_v3  ;;  %v448_v9 = vadd.f32 %v447_v7, %v1767_v63  ;;  %v521_v38 = vmul.f32 0.5, %v444_v3 }
 0x163   : > { %1281 = verf.f32 %v552_v5  ;;  %v554_v10 = vmul.f32 0.70710677, %v446_v6  ;;  %v522_v33 = vmul.f32 0.5, %v446_v6 }
 0x164   : > { %1283 = verf.f32 %v553_v8  ;;  %v555_v11 = vmul.f32 0.70710677, %v448_v9  ;;  %v523_v44 = vmul.f32 0.5, %v448_v9 }
 0x165   : > { %1285 = verf.f32 %v554_v10 }
 0x166   : > { %1287 = verf.f32 %v555_v11  ;;  %v451_v12 = vpop.f32.mrb[4].mxu0 }
 0x167   : > { %v452_v13 = vadd.f32 %v451_v12, %v1765_v62  ;;  %v453_v14 = vpop.f32.mrb[5].mxu0 }
 0x168   : > { %v454_v15 = vadd.f32 %v453_v14, %v1767_v63  ;;  %v455_v16 = vpop.f32.mrb[6].mxu0 }
 0x169   : > { %v556_v17 = vmul.f32 0.70710677, %v452_v13  ;;  %v456_v18 = vadd.f32 %v455_v16, %v1765_v62  ;;  %v457_v19 = vpop.f32.mrb[7].mxu0  ;;  %v524_v1 = vmul.f32 0.5, %v452_v13 }
 0x16a   : > { %v557_v20 = vmul.f32 0.70710677, %v454_v15  ;;  %v458_v21 = vadd.f32 %v457_v19, %v1767_v63  ;;  %v525_v6 = vmul.f32 0.5, %v454_v15 }
 0x16b   : > { %1289 = verf.f32 %v556_v17  ;;  %v558_v22 = vmul.f32 0.70710677, %v456_v18  ;;  %v526_v2 = vmul.f32 0.5, %v456_v18 }
 0x16c   : > { %1291 = verf.f32 %v557_v20  ;;  %v559_v23 = vmul.f32 0.70710677, %v458_v21  ;;  %v527_v7 = vmul.f32 0.5, %v458_v21 }
 0x16d   : > { %v1282_v24 = vpop.eup %1281  ;;  %1293 = verf.f32 %v558_v22 }
 0x16e   : > { %v1284_v25 = vpop.eup %1283  ;;  %1295 = verf.f32 %v559_v23  ;;  %v461_v26 = vpop.f32.mrb[8].mxu0  ;;  %v616_v29 = vadd.f32 1.0, %v1282_v24 }
 0x16f   : > { %v1286_v27 = vpop.eup %1285  ;;  %v1778_v30 = vadd.f32 %v461_v26, %v1765_v62  ;;  %v463_v31 = vpop.f32.mrb[9].mxu0  ;;  %v617_v37 = vadd.f32 1.0, %v1284_v25 }
 0x170   : > { %v1288_v32 = vpop.eup %1287  ;;  %v618_v34 = vadd.f32 1.0, %v1286_v27  ;;  %v1781_v35 = vadd.f32 %v463_v31, %v1767_v63  ;;  %v465_v36 = vpop.f32.mrb[10].mxu0  ;;  %v648_v47 = vmul.f32 %v616_v29, %v520_v28 }
 0x171   : > { %v560_v39 = vmul.f32 0.70710677, %v1778_v30  ;;  %v1785_v40 = vadd.f32 %v465_v36, %v1765_v62  ;;  %v467_v41 = vpop.f32.mrb[11].mxu0  ;;  %v619_v42 = vadd.f32 1.0, %v1288_v32  ;;  %v649_v50 = vmul.f32 %v617_v37, %v521_v38 }
 0x172   : > { %v650_v43 = vmul.f32 %v618_v34, %v522_v33  ;;  %v561_v45 = vmul.f32 0.70710677, %v1781_v35  ;;  %v1789_v46 = vadd.f32 %v467_v41, %v1767_v63  ;;  %v528_v32 = vmul.f32 0.5, %v1778_v30 }
 0x173   : > { %1297 = verf.f32 %v560_v39  ;;  %v562_v48 = vmul.f32 0.70710677, %v1785_v40  ;;  %v651_v51 = vmul.f32 %v619_v42, %v523_v44  ;;  %v530_v33 = vmul.f32 0.5, %v1785_v40 }
 0x174   : > { %1299 = verf.f32 %v561_v45  ;;  %v563_v49 = vmul.f32 0.70710677, %v1789_v46  ;;  %v680_v53 = vpack.c.bf16 %v650_v43, %v648_v47  ;;  %v529_v38 = vmul.f32 0.5, %v1781_v35 }
 0x175   : > { %v1290_v52 = vpop.eup %1289  ;;  %1301 = verf.f32 %v562_v48  ;;  %v681_v57 = vpack.c.bf16 %v651_v51, %v649_v50  ;;  %v531_v39 = vmul.f32 0.5, %v1789_v46 }
 0x176   : > { %v1292_v54 = vpop.eup %1291  ;;  %v620_v55 = vadd.f32 1.0, %v1290_v52  ;;  %1303 = verf.f32 %v563_v49  ;;  %v471_v56 = vpop.f32.mrb[12].mxu0 }
 0x177   : > { %v1294_v58 = vpop.eup %1293  ;;  %v621_v59 = vadd.f32 1.0, %v1292_v54  ;;  %v1794_v60 = vadd.f32 %v471_v56, %v1765_v62  ;;  %v473_v61 = vpop.f32.mrb[13].mxu0  ;;  %863 = vmatprep.mubr.bf16.mxu1 %v681_v57 }
 0x178   : > { %v1296_v0 = vpop.eup %1295  ;;  %v622_v3 = vadd.f32 1.0, %v1294_v58  ;;  %v1797_v4 = vadd.f32 %v473_v61, %v1767_v63  ;;  %v475_v5 = vpop.f32.mrb[14].mxu0  ;;  %864 = vmatmul.mubr.bf16.vlgmr.msra.gmra.mrb[0].mxu1 %v680_v53  ;;  %v652_v11 = vmul.f32 %v620_v55, %v524_v1 }
 0x179   : > { %v623_v8 = vadd.f32 1.0, %v1296_v0  ;;  %v564_v9 = vmul.f32 0.70710677, %v1794_v60  ;;  %v477_v10 = vpop.f32.mrb[15].mxu0  ;;  %v476_v13 = vadd.f32 %v475_v5, %v1765_v62  ;;  %v653_v16 = vmul.f32 %v621_v59, %v525_v6 }
 0x17a   : > { %v654_v12 = vmul.f32 %v622_v3, %v526_v2  ;;  %v565_v14 = vmul.f32 0.70710677, %v1797_v4  ;;  %v478_v18 = vadd.f32 %v477_v10, %v1767_v63  ;;  %v532_v59 = vmul.f32 0.5, %v1794_v60 }
 0x17b   : > { %v655_v17 = vmul.f32 %v623_v8, %v527_v7  ;;  %1305 = verf.f32 %v564_v9  ;;  %v566_v19 = vmul.f32 0.70710677, %v476_v13  ;;  %v533_v3 = vmul.f32 0.5, %v1797_v4 }
 0x17c   : > { %1307 = verf.f32 %v565_v14  ;;  %v682_v15 = vpack.c.bf16 %v654_v12, %v652_v11  ;;  %v567_v21 = vmul.f32 0.70710677, %v478_v18  ;;  %v534_v5 = vmul.f32 0.5, %v476_v13 }
 0x17d   : > { %v1298_v20 = vpop.eup %1297  ;;  %v683_v22 = vpack.c.bf16 %v655_v17, %v653_v16  ;;  %1309 = verf.f32 %v566_v19  ;;  %v535_v9 = vmul.f32 0.5, %v478_v18 }
 0x17e   : > { %v1300_v23 = vpop.eup %1299  ;;  %v624_v24 = vadd.f32 1.0, %v1298_v20  ;;  %v481_v25 = vpop.f32.mrb[16].mxu0  ;;  %1311 = verf.f32 %v567_v21 }
 0x17f   : > { %v1302_v26 = vpop.eup %1301  ;;  %v625_v27 = vadd.f32 1.0, %v1300_v23  ;;  %v1804_v28 = vadd.f32 %v481_v25, %v1765_v62  ;;  %v483_v29 = vpop.f32.mrb[17].mxu0  ;;  %871 = vmatprep.mubr.bf16.mxu1 %v683_v22 }
 0x180   : > { %v1304_v31 = vpop.eup %1303  ;;  %v626_v34 = vadd.f32 1.0, %v1302_v26  ;;  %v1809_v36 = vadd.f32 %v483_v29, %v1767_v63  ;;  %v485_v37 = vpop.f32.mrb[18].mxu0  ;;  %872 = vmatmul.mubr.bf16.gmra.mrb[4].mxu1 %v682_v15  ;;  %v656_v44 = vmul.f32 %v624_v24, %v528_v32 }
 0x181   : > { %v627_v41 = vadd.f32 1.0, %v1304_v31  ;;  %v568_v42 = vmul.f32 0.70710677, %v1804_v28  ;;  %v487_v43 = vpop.f32.mrb[19].mxu0  ;;  %v486_v40 = vadd.f32 %v485_v37, %v1765_v62  ;;  %v657_v47 = vmul.f32 %v625_v27, %v529_v38 }
 0x182   : > { %v658_v45 = vmul.f32 %v626_v34, %v530_v33  ;;  %v569_v30 = vmul.f32 0.70710677, %v1809_v36  ;;  %v488_v49 = vadd.f32 %v487_v43, %v1767_v63  ;;  %v536_v27 = vmul.f32 0.5, %v1804_v28 }
 0x183   : > { %v659_v48 = vmul.f32 %v627_v41, %v531_v39  ;;  %1313 = verf.f32 %v568_v42  ;;  %v570_v35 = vmul.f32 0.70710677, %v486_v40  ;;  %v537_v34 = vmul.f32 0.5, %v1809_v36 }
 0x184   : > { %1315 = verf.f32 %v569_v30  ;;  %v684_v50 = vpack.c.bf16 %v658_v45, %v656_v44  ;;  %v571_v51 = vmul.f32 0.70710677, %v488_v49  ;;  %v538_v37 = vmul.f32 0.5, %v486_v40 }
 0x185   : > { %v1306_v46 = vpop.eup %1305  ;;  %v685_v52 = vpack.c.bf16 %v659_v48, %v657_v47  ;;  %1317 = verf.f32 %v570_v35  ;;  %v539_v42 = vmul.f32 0.5, %v488_v49 }
 0x186   : > { %v1308_v53 = vpop.eup %1307  ;;  %v491_v54 = vpop.f32.mrb[20].mxu0  ;;  %v628_v55 = vadd.f32 1.0, %v1306_v46  ;;  %1319 = verf.f32 %v571_v51 }
 0x187   : > { %v1818_v56 = vadd.f32 %v491_v54, %v1765_v62  ;;  %v493_v57 = vpop.f32.mrb[21].mxu0  ;;  %879 = vmatprep.mubr.bf16.mxu1 %v685_v52  ;;  %v1310_v58 = vpop.eup %1309  ;;  %v629_v61 = vadd.f32 1.0, %v1308_v53 }
 0x188   : > { %v1822_v0 = vadd.f32 %v493_v57, %v1767_v63  ;;  %v495_v1 = vpop.f32.mrb[22].mxu0  ;;  %v1312_v2 = vpop.eup %1311  ;;  %v630_v6 = vadd.f32 1.0, %v1310_v58  ;;  %880 = vmatmul.mubr.bf16.gmra.mrb[8].mxu1 %v684_v50  ;;  %v660_v12 = vmul.f32 %v628_v55, %v532_v59 }
 0x189   : > { %v572_v7 = vmul.f32 0.70710677, %v1818_v56  ;;  %v497_v8 = vpop.f32.mrb[23].mxu0  ;;  %v631_v10 = vadd.f32 1.0, %v1312_v2  ;;  %v1828_v60 = vadd.f32 %v495_v1, %v1765_v62  ;;  %v661_v4 = vmul.f32 %v629_v61, %v533_v3 }
 0x18a   : > { %v573_v11 = vmul.f32 0.70710677, %v1822_v0  ;;  %v662_v14 = vmul.f32 %v630_v6, %v534_v5  ;;  %v1831_v16 = vadd.f32 %v497_v8, %v1767_v63  ;;  %v540_v58 = vmul.f32 0.5, %v1818_v56 }
 0x18b   : > { %1321 = verf.f32 %v572_v7  ;;  %v663_v13 = vmul.f32 %v631_v10, %v535_v9  ;;  %v574_v17 = vmul.f32 0.70710677, %v1828_v60  ;;  %v541_v3 = vmul.f32 0.5, %v1822_v0 }
 0x18c   : > { %1323 = verf.f32 %v573_v11  ;;  %v575_v18 = vmul.f32 0.70710677, %v1831_v16  ;;  %v686_v15 = vpack.c.bf16 %v662_v14, %v660_v12  ;;  %v542_v5 = vmul.f32 0.5, %v1828_v60 }
 0x18d   : > { %v1314_v19 = vpop.eup %1313  ;;  %1325 = verf.f32 %v574_v17  ;;  %v687_v22 = vpack.c.bf16 %v663_v13, %v661_v4  ;;  %v543_v9 = vmul.f32 0.5, %v1831_v16 }
 0x18e   : > { %v1316_v20 = vpop.eup %1315  ;;  %v501_v21 = vpop.f32.mrb[24].mxu0  ;;  %v632_v23 = vadd.f32 1.0, %v1314_v19  ;;  %1327 = verf.f32 %v575_v18 }
 0x18f   : > { %v1836_v24 = vadd.f32 %v501_v21, %v1765_v62  ;;  %v503_v25 = vpop.f32.mrb[25].mxu0  ;;  %v1318_v26 = vpop.eup %1317  ;;  %v633_v29 = vadd.f32 1.0, %v1316_v20  ;;  %887 = vmatprep.mubr.bf16.mxu1 %v687_v22 }
 0x190   : > { %v1840_v31 = vadd.f32 %v503_v25, %v1767_v63  ;;  %v505_v32 = vpop.f32.mrb[26].mxu0  ;;  %v1320_v33 = vpop.eup %1319  ;;  %v634_v38 = vadd.f32 1.0, %v1318_v26  ;;  %888 = vmatmul.mubr.bf16.gmra.mrb[12].mxu1 %v686_v15  ;;  %v664_v45 = vmul.f32 %v632_v23, %v536_v27 }
 0x191   : > { %v576_v39 = vmul.f32 0.70710677, %v1836_v24  ;;  %v507_v41 = vpop.f32.mrb[27].mxu0  ;;  %v635_v43 = vadd.f32 1.0, %v1320_v33  ;;  %v506_v28 = vadd.f32 %v505_v32, %v1765_v62  ;;  %v665_v48 = vmul.f32 %v633_v29, %v537_v34 }
 0x192   : > { %v577_v44 = vmul.f32 0.70710677, %v1840_v31  ;;  %v666_v30 = vmul.f32 %v634_v38, %v538_v37  ;;  %v508_v47 = vadd.f32 %v507_v41, %v1767_v63  ;;  %v544_v23 = vmul.f32 0.5, %v1836_v24 }
 0x193   : > { %1329 = verf.f32 %v576_v39  ;;  %v667_v35 = vmul.f32 %v635_v43, %v539_v42  ;;  %v578_v36 = vmul.f32 0.70710677, %v506_v28  ;;  %v546_v25 = vmul.f32 0.5, %v506_v28 }
 0x194   : > { %1331 = verf.f32 %v577_v44  ;;  %v579_v50 = vmul.f32 0.70710677, %v508_v47  ;;  %v688_v46 = vpack.c.bf16 %v666_v30, %v664_v45  ;;  %v545_v26 = vmul.f32 0.5, %v1840_v31 }
 0x195   : > { %v1322_v40 = vpop.eup %1321  ;;  %1333 = verf.f32 %v578_v36  ;;  %v689_v52 = vpack.c.bf16 %v667_v35, %v665_v48  ;;  %v547_v27 = vmul.f32 0.5, %v508_v47 }
 0x196   : > { %v1324_v51 = vpop.eup %1323  ;;  %v511_v49 = vpop.f32.mrb[28].mxu0  ;;  %v636_v53 = vadd.f32 1.0, %v1322_v40  ;;  %1335 = verf.f32 %v579_v50 }
 0x197   : > { %v512_v54 = vadd.f32 %v511_v49, %v1765_v62  ;;  %v513_v55 = vpop.f32.mrb[29].mxu0  ;;  %v1326_v57 = vpop.eup %1325  ;;  %v637_v59 = vadd.f32 1.0, %v1324_v51  ;;  %895 = vmatprep.mubr.bf16.mxu1 %v689_v52 }
 0x198   : > { %v514_v61 = vadd.f32 %v513_v55, %v1767_v63  ;;  %v515_v1 = vpop.f32.mrb[30].mxu0  ;;  %v1328_v2 = vpop.eup %1327  ;;  %v638_v6 = vadd.f32 1.0, %v1326_v57  ;;  %896 = vmatmul.mubr.bf16.gmra.mrb[16].mxu1 %v688_v46  ;;  %v668_v12 = vmul.f32 %v636_v53, %v540_v58  ;;  %v1860_v53 = vld [vmem:[%s1953_s4] ss:$0 sm:$0xff] }
 0x199   : > { %v580_v7 = vmul.f32 0.70710677, %v512_v54  ;;  %v517_v8 = vpop.f32.mrb[31].mxu0  ;;  %v639_v10 = vadd.f32 1.0, %v1328_v2  ;;  %v516_v56 = vadd.f32 %v515_v1, %v1765_v62  ;;  %v669_v13 = vmul.f32 %v637_v59, %v541_v3 }
 0x19a   : > { %v581_v11 = vmul.f32 0.70710677, %v514_v61  ;;  %v670_v14 = vmul.f32 %v638_v6, %v542_v5  ;;  %v518_v4 = vadd.f32 %v517_v8, %v1767_v63  ;;  %v548_v28 = vmul.f32 0.5, %v512_v54 }
 0x19b   : > { %1337 = verf.f32 %v580_v7  ;;  %v671_v17 = vmul.f32 %v639_v10, %v543_v9  ;;  %v582_v0 = vmul.f32 0.70710677, %v516_v56  ;;  %v550_v30 = vmul.f32 0.5, %v516_v56 }
 0x19c   : > { %1339 = verf.f32 %v581_v11  ;;  %v583_v19 = vmul.f32 0.70710677, %v518_v4  ;;  %v690_v18 = vpack.c.bf16 %v670_v14, %v668_v12  ;;  %v549_v31 = vmul.f32 0.5, %v514_v61 }
 0x19d   : > { %v1330_v60 = vpop.eup %1329  ;;  %1341 = verf.f32 %v582_v0  ;;  %v691_v20 = vpack.c.bf16 %v671_v17, %v669_v13  ;;  %v551_v47 = vmul.f32 0.5, %v518_v4 }
 0x19e   : > { %v1332_v15 = vpop.eup %1331  ;;  %v640_v16 = vadd.f32 1.0, %v1330_v60  ;;  %1343 = verf.f32 %v583_v19 }
 0x19f   : > { %v1334_v21 = vpop.eup %1333  ;;  %v641_v22 = vadd.f32 1.0, %v1332_v15  ;;  %903 = vmatprep.mubr.bf16.mxu1 %v691_v20 }
 0x1a0   : > { %v1336_v62 = vpop.eup %1335  ;;  %v642_v63 = vadd.f32 1.0, %v1334_v21  ;;  %904 = vmatmul.mubr.bf16.gmra.mrb[20].mxu1 %v690_v18  ;;  %v672_v32 = vmul.f32 %v640_v16, %v544_v23 }
 0x1a1   : > { %v643_v29 = vadd.f32 1.0, %v1336_v62  ;;  %v673_v34 = vmul.f32 %v641_v22, %v545_v26 }
 0x1a2   : > { %v674_v33 = vmul.f32 %v642_v63, %v546_v25 }
 0x1a3   : > { %v675_v37 = vmul.f32 %v643_v29, %v547_v27 }
 0x1a4   : > { %v692_v39 = vpack.c.bf16 %v674_v33, %v672_v32 }
 0x1a5   : > { %v1338_v38 = vpop.eup %1337  ;;  %v693_v42 = vpack.c.bf16 %v675_v37, %v673_v34 }
 0x1a6   : > { %v1340_v41 = vpop.eup %1339  ;;  %v644_v43 = vadd.f32 1.0, %v1338_v38 }
 0x1a7   : > { %v1342_v44 = vpop.eup %1341  ;;  %v645_v45 = vadd.f32 1.0, %v1340_v41  ;;  %911 = vmatprep.mubr.bf16.mxu1 %v693_v42 }
 0x1a8   : > { %v1344_v24 = vpop.eup %1343  ;;  %v646_v48 = vadd.f32 1.0, %v1342_v44  ;;  %912 = vmatmul.mubr.bf16.gmra.mrb[24].mxu1 %v692_v39  ;;  %v676_v36 = vmul.f32 %v644_v43, %v548_v28 }
 0x1a9   : > { %v647_v35 = vadd.f32 1.0, %v1344_v24  ;;  %v677_v50 = vmul.f32 %v645_v45, %v549_v31 }
 0x1aa   : > { %v678_v40 = vmul.f32 %v646_v48, %v550_v30 }
 0x1ab   : > { %v679_v46 = vmul.f32 %v647_v35, %v551_v47 }
 0x1ac   : > { %v694_v51 = vpack.c.bf16 %v678_v40, %v676_v36 }
 0x1ad   : > { %v695_v49 = vpack.c.bf16 %v679_v46, %v677_v50 }
 0x1af   : > { %919 = vmatprep.mubr.bf16.mxu1 %v695_v49 }
 0x1b0   : > { %920 = vmatmul.mubr.bf16.gmra.mrb[28].mxu1 %v694_v51 }
 0x24b   : > { %v1119_v52 = vpop.f32.mrb[0].mxu1 }
 0x24c   : > { %v1120_v54 = vpop.f32.mrb[1].mxu1 }
 0x24d   : > { %v1121_v55 = vadd.f32 %v1120_v54, %v1119_v52  ;;  %v1122_v57 = vpop.f32.mrb[2].mxu1 }
 0x24e   : > { %v1123_v58 = vpop.f32.mrb[3].mxu1 }
 0x24f   : > { %v866_v59 = vadd.f32 %v1121_v55, %v1860_v53  ;;  %v1124_v61 = vadd.f32 %v1123_v58, %v1122_v57 }
 0x251   : > { %928 = vst [vmem:[%s1865_s28] sm:$0xff] %v866_v59  ;;  %v869_v1 = vadd.f32 %v1124_v61, %v1860_v53 }
 0x253   : > { %929 = vst [vmem:[%s1865_s28 + $0x8] sm:$0xff] %v869_v1  ;;  %v1125_v2 = vpop.f32.mrb[4].mxu1 }
 0x254   : > { %v1126_v3 = vpop.f32.mrb[5].mxu1 }
 0x255   : > { %v1127_v5 = vadd.f32 %v1126_v3, %v1125_v2  ;;  %v1128_v6 = vpop.f32.mrb[6].mxu1 }
 0x256   : > { %v1129_v7 = vpop.f32.mrb[7].mxu1 }
 0x257   : > { %v874_v8 = vadd.f32 %v1127_v5, %v1860_v53  ;;  %v1130_v9 = vadd.f32 %v1129_v7, %v1128_v6 }
 0x259   : > { %930 = vst [vmem:[%s1865_s28 + $0x10] sm:$0xff] %v874_v8  ;;  %v877_v10 = vadd.f32 %v1130_v9, %v1860_v53 }
 0x25b   : > { %931 = vst [vmem:[%s1865_s28 + $0x18] sm:$0xff] %v877_v10  ;;  %v1131_v11 = vpop.f32.mrb[8].mxu1 }
 0x25c   : > { %v1132_v56 = vpop.f32.mrb[9].mxu1 }
 0x25d   : > { %v1133_v12 = vadd.f32 %v1132_v56, %v1131_v11  ;;  %v1134_v14 = vpop.f32.mrb[10].mxu1 }
 0x25e   : > { %v1135_v4 = vpop.f32.mrb[11].mxu1 }
 0x25f   : > { %v882_v13 = vadd.f32 %v1133_v12, %v1860_v53  ;;  %v1136_v17 = vadd.f32 %v1135_v4, %v1134_v14 }
 0x261   : > { %932 = vst [vmem:[%s1865_s28 + $0x20] sm:$0xff] %v882_v13  ;;  %v885_v0 = vadd.f32 %v1136_v17, %v1860_v53 }
 0x263   : > { %933 = vst [vmem:[%s1865_s28 + $0x28] sm:$0xff] %v885_v0  ;;  %v1137_v60 = vpop.f32.mrb[12].mxu1 }
 0x264   : > { %v1138_v19 = vpop.f32.mrb[13].mxu1 }
 0x265   : > { %v1139_v18 = vadd.f32 %v1138_v19, %v1137_v60  ;;  %v1140_v15 = vpop.f32.mrb[14].mxu1 }
 0x266   : > { %v1141_v20 = vpop.f32.mrb[15].mxu1 }
 0x267   : > { %v890_v16 = vadd.f32 %v1139_v18, %v1860_v53  ;;  %v1142_v21 = vadd.f32 %v1141_v20, %v1140_v15 }
 0x269   : > { %934 = vst [vmem:[%s1865_s28 + $0x30] sm:$0xff] %v890_v16  ;;  %v893_v22 = vadd.f32 %v1142_v21, %v1860_v53 }
 0x26b   : > { %935 = vst [vmem:[%s1865_s28 + $0x38] sm:$0xff] %v893_v22  ;;  %v1143_v62 = vpop.f32.mrb[16].mxu1 }
 0x26c   : > { %v1144_v23 = vpop.f32.mrb[17].mxu1 }
 0x26d   : > { %v1145_v25 = vadd.f32 %v1144_v23, %v1143_v62  ;;  %v1146_v63 = vpop.f32.mrb[18].mxu1 }
 0x26e   : > { %v1147_v26 = vpop.f32.mrb[19].mxu1 }
 0x26f   : > { %v898_v27 = vadd.f32 %v1145_v25, %v1860_v53  ;;  %v1148_v29 = vadd.f32 %v1147_v26, %v1146_v63 }
 0x271   : > { %936 = vst [vmem:[%s1865_s28 + $0x40] sm:$0xff] %v898_v27  ;;  %v901_v32 = vadd.f32 %v1148_v29, %v1860_v53 }
 0x273   : > { %937 = vst [vmem:[%s1865_s28 + $0x48] sm:$0xff] %v901_v32  ;;  %v1149_v33 = vpop.f32.mrb[20].mxu1 }
 0x274   : > { %v1150_v34 = vpop.f32.mrb[21].mxu1 }
 0x275   : > { %v1151_v37 = vadd.f32 %v1150_v34, %v1149_v33  ;;  %v1152_v38 = vpop.f32.mrb[22].mxu1 }
 0x276   : > { %v1153_v39 = vpop.f32.mrb[23].mxu1 }
 0x277   : > { %v906_v41 = vadd.f32 %v1151_v37, %v1860_v53  ;;  %v1154_v42 = vadd.f32 %v1153_v39, %v1152_v38 }
 0x279   : > { %938 = vst [vmem:[%s1865_s28 + $0x50] sm:$0xff] %v906_v41  ;;  %v909_v43 = vadd.f32 %v1154_v42, %v1860_v53 }
 0x27b   : > { %939 = vst [vmem:[%s1865_s28 + $0x58] sm:$0xff] %v909_v43  ;;  %v1155_v44 = vpop.f32.mrb[24].mxu1 }
 0x27c   : > { %v1156_v45 = vpop.f32.mrb[25].mxu1 }
 0x27d   : > { %v1157_v24 = vadd.f32 %v1156_v45, %v1155_v44  ;;  %v1158_v28 = vpop.f32.mrb[26].mxu1 }
 0x27e   : > { %v1159_v30 = vpop.f32.mrb[27].mxu1 }
 0x27f   : > { %v914_v48 = vadd.f32 %v1157_v24, %v1860_v53  ;;  %v1160_v31 = vadd.f32 %v1159_v30, %v1158_v28 }
 0x281   : > { %940 = vst [vmem:[%s1865_s28 + $0x60] sm:$0xff] %v914_v48  ;;  %v917_v47 = vadd.f32 %v1160_v31, %v1860_v53 }
 0x283   : > { %941 = vst [vmem:[%s1865_s28 + $0x68] sm:$0xff] %v917_v47  ;;  %v1161_v35 = vpop.f32.mrb[28].mxu1 }
 0x284   : > { %v1162_v36 = vpop.f32.mrb[29].mxu1 }
 0x285   : > { %v1163_v40 = vadd.f32 %v1162_v36, %v1161_v35  ;;  %v1164_v50 = vpop.f32.mrb[30].mxu1 }
 0x286   : > { %v1165_v46 = vpop.f32.mrb[31].mxu1 }
 0x287   : > { %v922_v51 = vadd.f32 %v1163_v40, %v1860_v53  ;;  %v1166_v49 = vadd.f32 %v1165_v46, %v1164_v50 }
 0x289   : > { %942 = vst [vmem:[%s1865_s28 + $0x70] sm:$0xff] %v922_v51  ;;  %v925_v52 = vadd.f32 %v1166_v49, %v1860_v53 }
 0x28b   : > { %943 = vst [vmem:[%s1865_s28 + $0x78] sm:$0xff] %v925_v52 }
 0x28c   : > { %1444 = shalt.err (!%p1441_p1)
}
 0x28d   : > { %s1445_s14 = scalar_lea.hbm %s1900_s12, 2048  ;;  %s1449_s15 = scalar_lea.hbm %s1954_s5, 4096 }
 0x28e   : > { %p1446_p13 = scmp.ne.s32.totalorder %s1900_s12, %s1445_s14  ;;  %p1450_p4 = scmp.lt.u32.totalorder %s1900_s12, %s1954_s5 }
 0x28f   : > { %p1451_p7 = scmp.lt.u32.totalorder %s1449_s15, %s1445_s14  ;;  %p1453_p11 = scmp.lt.u32.totalorder %s1445_s14, %s1900_s12 }
 0x290   : > { %p1447_p6 = pnand %p1446_p13, %p1968_p0 }
 0x291   : > { %p1452_p8 = por %p1451_p7, %p1450_p4 }
 0x292   : > { %p1448_p10 = pneg %p1447_p6 }
 0x293   : > { %p1454_p2 = por %p1453_p11, %p1452_p8 }
 0x295   : > { %p1455_p3 = pnand %p1454_p2, %p1448_p10 }
 0x297   : > { %1458 = shalt.err (!%p1455_p3)
}
 0x298   : > { %s1512_s13 = smov 128   ;;  %s1513_s11 = smov 8  }
 0x299   : > { %1177 = dma.vmem_to_hbm [thread:$0]  (%p1968_p0), %s1902_s17, 2048, %s1900_s12, %s945_s22, %s1512_s13, %s1512_s13, %s1513_s11  }
 0x29a PF: > { %s973_s29 = sand.u32 1, %s1489_s18   ;;  %p1969_p5 = scmp.ne.s32.totalorder %s1959_s25, 0 }
 0x29b   : > { %p1970_p9 = scmp.ge.s32.totalorder %s1501_s21, 2  ;;  %s974_s30 = scalar_lea.sflag [#allocation4], %s973_s29 }
 0x29d   : > { %p1191_p12 = pnand %p1970_p9, %p1969_p5 }
 0x29f   : > { %1484 = dma.done.wait (!%p1191_p12), %s974_s30, 2048  }
 0x2a0   : > { %1486 = vsyncadd (!%p1191_p12), %s974_s30, 4294965248  ;;  %p19_p1 = scmp.ge.s32.totalorder %s1657_s23, 4   ;;  %s1971_s18 = smov %s1493_s19 }
 0x2a1   : > { %s1972_s19 = smov %s1497_s20  ;;  %s1973_s20 = smov %s1666_s7 }
 0x2a2   : > { %s1974_s21 = smov %s1657_s23  ;;  %21 = sbr.rel (!%p19_p1) target bundleno = 6 (0x6), region = 93 }
 0x2a9   :  { %979 = vsyncpa [#allocation3], 1 }
 0x2aa   :  { %981 = vsyncpa [#allocation3 + $0x1], 1 }
 0x2ab   :  { %982 = vsyncpa [#allocation6], 1 }
 0x2ac   :  { %983 = vsyncpa [#allocation4], 1 }
 0x2ad   :  { %985 = vsyncpa [#allocation4 + $0x1], 1 }

</bundles_post_ra>
